<compile_context>
chip_gen: v5e
topology: v5e:2x2
jax: 0.10.0
libtpu: 0.0.40
codegen_flags: <defaults>
</compile_context>

<pallas_src>
import functools

import jax
import jax.numpy as jnp
from jax import lax
from jax.experimental import pallas as pl
from jax.experimental.pallas import tpu as pltpu


# ----------------------------------------------------------------------------- kernel


def _rcu_kernel(x_ref, top_ref, bot_ref, w1_ref, b1_ref, w2_ref, o_ref, *,
                tile_h, width, width_pad, fold9):
    """One (batch, row-tile) grid step.

    x_ref  : (1, TH*Wp, C)  flat row tile of the original (un-activated) input
    top_ref: (1, 2*Wp,  C)  2 rows just above the tile (garbage when tile is at top)
    bot_ref: (1, 2*Wp,  C)  2 rows just below the tile (garbage when tile is at bottom)
    w1_ref : (9C, C) if fold9 else (3, 3, C, C)   conv1 weights (MXU dtype)
    b1_ref : (1, C)  f32    conv1 bias
    w2_ref : same layout as w1_ref                 conv2 weights
    o_ref  : (1, TH*Wp, C)  output tile
    """
    f32 = jnp.float32
    TH, W, Wp = tile_h, width, width_pad
    C = x_ref.shape[-1]
    j = pl.program_id(1)
    nt = pl.num_programs(1)
    mxu_dtype = w1_ref.dtype                      # bf16 (default) or f32

    def col_index(n_rows):
        # flat-pixel -> column index, built without integer div/mod.
        return lax.broadcasted_iota(jnp.int32, (n_rows, Wp, 1), 1).reshape(n_rows * Wp, 1)

    # ---- assemble the (TH+4)-row extended tile (2 halo rows each side), flat ----
    x_mid = x_ref[0].astype(f32)                                    # (TH*Wp, C), residual
    top = jnp.where(j == 0, 0.0, top_ref[0].astype(f32))            # image top => zero pad
    bot = jnp.where(j == nt - 1, 0.0, bot_ref[0].astype(f32))       # image bottom => zero
    a = jnp.maximum(jnp.concatenate([top, x_mid, bot], axis=0), 0.0)  # relu(x); pad stays 0

    def conv3x3(src, w_ref, rows_out):
        """3x3 'SAME'(W) conv: src ((rows_out+2)*Wp, C) f32 -> (rows_out*Wp, C) f32."""
        n_src = src.shape[0]
        col = col_index(rows_out + 2)

        def shifted(dx):
            # Tap dx needs in[..., x + dx - 1]: roll by (1 - dx) along the flat pixel
            # axis (jnp.roll semantics); the wrapped column is exactly conv's zero pad.
            s = (1 - dx) % n_src
            if s == 0:
                return src.astype(mxu_dtype)
            rolled = pltpu.roll(src, shift=s, axis=0)
            edge = 0 if dx == 0 else Wp - 1
            return jnp.where(col == edge, 0.0, rolled).astype(mxu_dtype)

        shf = [shifted(dx) for dx in range(3)]
        npix = rows_out * Wp
        if fold9:
            # Small C: one MXU dot with K = 9C (lane concat fills the contraction dim).
            p = jnp.concatenate(
                [shf[dx][dy * Wp: dy * Wp + npix] for dy in range(3) for dx in range(3)],
                axis=-1)
            return jnp.dot(p, w_ref[...], preferred_element_type=f32)
        # Large C: nine accumulating dots with K = C — no im2col patch is materialized.
        acc = None
        for dy in range(3):
            for dx in range(3):
                d = jnp.dot(shf[dx][dy * Wp: dy * Wp + npix], w_ref[dy, dx],
                            preferred_element_type=f32)
                acc = d if acc is None else acc + d
        return acc

    # ---- conv1 (+bias, ReLU) on TH+2 rows (1 extra row each side for conv2) ----
    h = jnp.maximum(conv3x3(a, w1_ref, TH + 2) + b1_ref[...], 0.0)
    # Rows of h that fall outside the image act as conv2's zero padding, so they must
    # not keep the value computed from phantom rows.  Only rows 0 and TH+1 can ever be
    # phantom -> a tiny (pixels, 1) mask broadcast over lanes.
    pix = lax.broadcasted_iota(jnp.int32, ((TH + 2) * Wp, 1), 0)
    keep = ((pix >= Wp) | (j > 0)) & ((pix < (TH + 1) * Wp) | (j < nt - 1))
    if Wp != W:                      # W padded to a multiple of 8: pad columns of h are
        keep = keep & (col_index(TH + 2) < W)   # garbage -> zero them as well.
    h = jnp.where(keep, h, 0.0)

    # ---- conv2 (no bias) on the TH output rows, then residual add ---------------
    y = conv3x3(h, w2_ref, TH)
    o_ref[0] = (y + x_mid).astype(o_ref.dtype)


# ----------------------------------------------------------------------------- sizing


def _vmem_capacity_bytes():
    """Per-TensorCore VMEM capacity; conservative 64 MiB (v7x) if unknown."""
    try:
        cap = getattr(pltpu.get_tpu_info(), "vmem_capacity_bytes", None)
        if cap:
            return int(cap)
    except Exception:
        pass
    return 64 << 20


def _vmem_bytes(tile_h, w_pad, c, store_isz, mxu_isz, fold9):
    """Per-grid-step VMEM footprint: pipeline buffers + in-kernel live values."""
    wc = w_pad * c
    rows_ext = tile_h + 4
    # Pallas double-buffers every pipelined operand: x tile, out tile, two 2-row halos,
    # both weight tensors and the bias (weights are constant but still double-buffered).
    bufs = 2 * store_isz * (2 * tile_h * wc + 2 * 2 * wc)
    bufs += 2 * (2 * 9 * c * c * mxu_isz + 4 * c)
    # Live in-kernel values (peak ~ conv1 phase; conv2 accumulator while h is alive).
    live = 4 * (rows_ext * wc            # relu'd extended tile (f32)
                + tile_h * wc            # x_mid kept for the residual (f32)
                + (tile_h + 2) * wc      # h / conv1 accumulator (f32)
                + tile_h * wc)           # conv2 accumulator (f32)
    live += mxu_isz * 3 * rows_ext * wc  # three W-shifted MXU operands
    if fold9:
        live += mxu_isz * (tile_h + 2) * w_pad * 9 * c   # im2col patch (single dot)
    return bufs + live


def _pick_tile_h(h, w_pad, c, store_isz, mxu_isz, fold9, budget, batch):
    """Largest even divisor of H under `budget`; prefer keeping batch*tiles even so
    both TensorCores of a v7x chip get equal work."""
    cands = [th for th in range(2, h + 1, 2)
             if h % th == 0
             and _vmem_bytes(th, w_pad, c, store_isz, mxu_isz, fold9) <= budget]
    if not cands:
        return 2
    even = [th for th in cands if (batch * (h // th)) % 2 == 0]
    return max(even if even else cands)


# ----------------------------------------------------------------------------- wrapper


def residual_conv_unit_nhwc(x_nhwc, w1_hwio, b1, w2_hwio, *, tile_h=None,
                            fold9=None, dtype=None, mxu_dtype=None):
    """ResidualConvUnit_custom forward on an NHWC input (no layout transposes)."""
    B, H, W, C = x_nhwc.shape
    assert w1_hwio.shape == (3, 3, C, C) and w2_hwio.shape == (3, 3, C, C)
    assert b1.shape == (C,)
    assert H % 2 == 0, "H must be even"
    # TODO(synk): support odd H / ragged row tiles via a masked last tile.

    store_dt = jnp.dtype(dtype) if dtype is not None else jnp.dtype(x_nhwc.dtype)
    mxu_dt = jnp.dtype(mxu_dtype) if mxu_dtype is not None else jnp.dtype(jnp.bfloat16)
    if fold9 is None:
        fold9 = C < 128              # fold all 9 taps into one K=9C dot for small C
    # TODO(synk): for very small C a weights-as-LHS / lane-dense-output orientation
    #             would fill lanes and the store path better; not implemented here.

    # Pad W to a multiple of 8 so every flat row slice / reshape stays layout-preserving.
    Wp = -(-W // 8) * 8
    x = x_nhwc.astype(store_dt)
    if Wp != W:
        x = jnp.pad(x, ((0, 0), (0, 0), (0, Wp - W), (0, 0)))

    # Generation-aware VMEM budget (v5e/v6e: 128 MiB, v7x: 64 MiB per TensorCore).
    limit_cap = min(_vmem_capacity_bytes() * 2 // 3, 96 << 20)
    if tile_h is None:
        tile_h = _pick_tile_h(H, Wp, C, store_dt.itemsize, mxu_dt.itemsize, fold9,
                              budget=limit_cap // 2, batch=B)
    assert tile_h % 2 == 0 and H % tile_h == 0, "tile_h must be even and divide H"
    th = tile_h
    nt = H // th
    hhalf = th // 2                  # tile height in units of 2-row halo blocks
    nhb = H // 2                     # number of 2-row halo blocks along H

    est = _vmem_bytes(th, Wp, C, store_dt.itemsize, mxu_dt.itemsize, fold9)
    vmem_limit = int(min(max(est * 5 // 4, 16 << 20), limit_cap))

    x_flat = x.reshape(B, H * Wp, C)

    if fold9:
        w1 = w1_hwio.reshape(9 * C, C).astype(mxu_dt)    # tap-major (dy, dx, cin)
        w2 = w2_hwio.reshape(9 * C, C).astype(mxu_dt)
        w_spec = pl.BlockSpec((9 * C, C), lambda b, j: (0, 0))
    else:
        w1 = w1_hwio.astype(mxu_dt)                       # keep (3, 3, C, C) HWIO
        w2 = w2_hwio.astype(mxu_dt)
        w_spec = pl.BlockSpec((3, 3, C, C), lambda b, j: (0, 0, 0, 0))
    # TODO(synk): weights/bias are constant over the grid but still double-buffered;
    #             pipeline_mode=pl.Buffered(1) would reclaim that VMEM on v7x.
    b1_2d = b1.reshape(1, C).astype(jnp.float32)

    kernel = functools.partial(_rcu_kernel, tile_h=th, width=W, width_pad=Wp,
                               fold9=fold9)

    out_flat = pl.pallas_call(
        kernel,
        out_shape=jax.ShapeDtypeStruct((B, H * Wp, C), store_dt),
        grid_spec=pltpu.PrefetchScalarGridSpec(
            num_scalar_prefetch=0,
            grid=(B, nt),
            in_specs=[
                # main row tile (flattened pixels, channels on lanes)
                pl.BlockSpec((1, th * Wp, C), lambda b, j: (b, j, 0)),
                # 2-row halo above (clamped at the top, zero-masked in-kernel)
                pl.BlockSpec((1, 2 * Wp, C),
                             lambda b, j: (b, jnp.maximum(j * hhalf - 1, 0), 0)),
                # 2-row halo below (clamped at the bottom, zero-masked in-kernel)
                pl.BlockSpec((1, 2 * Wp, C),
                             lambda b, j: (b, jnp.minimum((j + 1) * hhalf, nhb - 1), 0)),
                w_spec,                                       # conv1 weights
                pl.BlockSpec((1, C), lambda b, j: (0, 0)),    # conv1 bias (f32)
                w_spec,                                       # conv2 weights
            ],
            out_specs=pl.BlockSpec((1, th * Wp, C), lambda b, j: (b, j, 0)),
        ),
        compiler_params=pltpu.CompilerParams(
            dimension_semantics=("parallel", "parallel"),
            vmem_limit_bytes=vmem_limit),
    )(x_flat, x_flat, x_flat, w1, b1_2d, w2)

    out = out_flat.reshape(B, H, Wp, C)
    if Wp != W:
        out = out[:, :, :W, :]
    return out


def residual_conv_unit(x_nchw, w1_hwio, b1, w2_hwio, **kwargs):
    """ResidualConvUnit_custom forward, NCHW interface (matches the PyTorch module).

    x_nchw : (B, C, H, W)
    w1_hwio, w2_hwio : (3, 3, C, C) conv weights in HWIO layout
        (from PyTorch:  w_hwio = conv.weight.permute(2, 3, 1, 0) ).
    b1 : (C,) conv1 bias.
    """
    # TODO(synk): the NCHW<->NHWC transposes remain standalone XLA ops; call
    #             residual_conv_unit_nhwc directly when the data is already NHWC.
    x = jnp.transpose(x_nchw, (0, 2, 3, 1))
    out = residual_conv_unit_nhwc(x, w1_hwio, b1, w2_hwio, **kwargs)
    return jnp.transpose(out, (0, 3, 1, 2))


# ----------------------------------------------------------------------------- reference


def residual_conv_unit_ref(x_nchw, w1_hwio, b1, w2_hwio):
    """Pure-JAX reference (NHWC convs via lax.conv_general_dilated, f32)."""
    x = jnp.transpose(x_nchw, (0, 2, 3, 1))
    a = jnp.maximum(x, 0.0)
    y = lax.conv_general_dilated(
        a, w1_hwio, (1, 1), "SAME",
        dimension_numbers=("NHWC", "HWIO", "NHWC"),
        precision=lax.Precision.HIGHEST) + b1
    y = jnp.maximum(y, 0.0)
    y = lax.conv_general_dilated(
        y, w2_hwio, (1, 1), "SAME",
        dimension_numbers=("NHWC", "HWIO", "NHWC"),
        precision=lax.Precision.HIGHEST)
    return jnp.transpose(y + x, (0, 3, 1, 2))


# ----------------------------------------------------------------------------- test


if __name__ == "__main__":
    def make_params(key, c):
        kx, kw1, kb1, kw2 = jax.random.split(key, 4)
        w1 = 0.1 * jax.random.normal(kw1, (3, 3, c, c), jnp.float32)
        b1 = 0.1 * jax.random.normal(kb1, (c,), jnp.float32)
        w2 = 0.1 * jax.random.normal(kw2, (3, 3, c, c), jnp.float32)
        return kx, w1, b1, w2

    # Shapes consistent with the module: B=2, features C=4, 16x16 spatial.
    B, C, H, W = 2, 4, 16, 16
    kx, w1, b1, w2 = make_params(jax.random.PRNGKey(0), C)
    x = jax.random.normal(kx, (B, C, H, W), jnp.float32)
    ref = jax.block_until_ready(residual_conv_unit_ref(x, w1, b1, w2))

    # f32-MXU paths (tight tolerance): multi-tile halos + both conv lowering modes.
    for cfg in (dict(tile_h=4, fold9=True),     # 4 row tiles: interior + border tiles
                dict(tile_h=8, fold9=False)):   # 2 tiles, nine-dot (K=C) path
        out = jax.block_until_ready(
            residual_conv_unit(x, w1, b1, w2, mxu_dtype=jnp.float32, **cfg))
        assert out.shape == (B, C, H, W)
        assert jnp.allclose(out, ref, atol=1e-3, rtol=1e-3), f"f32 mismatch: {cfg}"

    # Default path: auto tile size, auto fold, bf16 MXU operands (f32 accumulation).
    out = jax.block_until_ready(residual_conv_unit(x, w1, b1, w2))
    assert out.shape == (B, C, H, W)
    assert jnp.allclose(out, ref, atol=3e-2, rtol=3e-2), "bf16-MXU mismatch"

    # bf16 storage as well (residual uses the bf16-rounded x -> looser tolerance).
    out_bf16 = jax.block_until_ready(
        residual_conv_unit(x, w1, b1, w2, dtype=jnp.bfloat16))
    assert out_bf16.dtype == jnp.bfloat16
    assert jnp.allclose(out_bf16.astype(jnp.float32), ref, atol=5e-2, rtol=5e-2), \
        "bf16-storage mismatch"

    # W not a multiple of 8 (exercises the in-kernel pad-column masking).
    B2, C2, H2, W2 = 1, 8, 8, 12
    kx2, w1b, b1b, w2b = make_params(jax.random.PRNGKey(1), C2)
    x2 = jax.random.normal(kx2, (B2, C2, H2, W2), jnp.float32)
    ref2 = jax.block_until_ready(residual_conv_unit_ref(x2, w1b, b1b, w2b))
    out2 = jax.block_until_ready(
        residual_conv_unit(x2, w1b, b1b, w2b, tile_h=4, mxu_dtype=jnp.float32))
    assert jnp.allclose(out2, ref2, atol=1e-3, rtol=1e-3), "padded-W mismatch"

    print("KERNEL_OK")
</pallas_src>

<mosaic_0001>
module attributes {stable_mosaic.version = 11 : i64} {
  func.func @_rcu_kernel(%arg0: i32, %arg1: i32, %arg2: memref<1x64x4xf32, #tpu.memory_space<vmem>>, %arg3: memref<1x32x4xf32, #tpu.memory_space<vmem>>, %arg4: memref<1x32x4xf32, #tpu.memory_space<vmem>>, %arg5: memref<36x4xf32, #tpu.memory_space<vmem>>, %arg6: memref<1x4xf32, #tpu.memory_space<vmem>>, %arg7: memref<36x4xf32, #tpu.memory_space<vmem>>, %arg8: memref<1x64x4xf32, #tpu.memory_space<vmem>>) attributes {dimension_semantics = [#tpu.dimension_semantics<parallel>, #tpu.dimension_semantics<parallel>], iteration_bounds = array<i64: 2, 4>, scalar_prefetch = 0 : i64, scratch_operands = 0 : i64, tpu.core_type = #tpu.core_type<tc>, window_params = [{transform_indices = @transform_0, window_bounds = array<i64: 1, 64, 4>}, {transform_indices = @transform_1, window_bounds = array<i64: 1, 32, 4>}, {transform_indices = @transform_2, window_bounds = array<i64: 1, 32, 4>}, {pipeline_mode = #tpu.pipeline_mode<synchronous>, transform_indices = @transform_3, window_bounds = array<i64: 36, 4>}, {pipeline_mode = #tpu.pipeline_mode<synchronous>, transform_indices = @transform_4, window_bounds = array<i64: 1, 4>}, {pipeline_mode = #tpu.pipeline_mode<synchronous>, transform_indices = @transform_5, window_bounds = array<i64: 36, 4>}, {transform_indices = @transform_6, window_bounds = array<i64: 1, 64, 4>}]} {
    %c0 = arith.constant 0 : index
    %c0_0 = arith.constant 0 : index
    %c0_1 = arith.constant 0 : index
    %0 = vector.load %arg2[%c0, %c0_0, %c0_1] : memref<1x64x4xf32, #tpu.memory_space<vmem>>, vector<1x64x4xf32>
    %1 = vector.shape_cast %0 : vector<1x64x4xf32> to vector<64x4xf32>
    %c0_i32 = arith.constant 0 : i32
    %2 = arith.cmpi eq, %arg1, %c0_i32 : i32
    %c0_2 = arith.constant 0 : index
    %c0_3 = arith.constant 0 : index
    %c0_4 = arith.constant 0 : index
    %3 = vector.load %arg3[%c0_2, %c0_3, %c0_4] : memref<1x32x4xf32, #tpu.memory_space<vmem>>, vector<1x32x4xf32>
    %4 = vector.shape_cast %3 : vector<1x32x4xf32> to vector<32x4xf32>
    %cst = arith.constant 0.000000e+00 : f32
    %5 = vector.broadcast %cst : f32 to vector<32x4xf32>
    %6 = arith.select %2, %5, %4 : vector<32x4xf32>
    %c3_i32 = arith.constant 3 : i32
    %7 = arith.cmpi eq, %arg1, %c3_i32 : i32
    %c0_5 = arith.constant 0 : index
    %c0_6 = arith.constant 0 : index
    %c0_7 = arith.constant 0 : index
    %8 = vector.load %arg4[%c0_5, %c0_6, %c0_7] : memref<1x32x4xf32, #tpu.memory_space<vmem>>, vector<1x32x4xf32>
    %9 = vector.shape_cast %8 : vector<1x32x4xf32> to vector<32x4xf32>
    %cst_8 = arith.constant 0.000000e+00 : f32
    %10 = vector.broadcast %cst_8 : f32 to vector<32x4xf32>
    %11 = arith.select %7, %10, %9 : vector<32x4xf32>
    %12 = tpu.concatenate %6, %1, %11 in 0 : vector<32x4xf32>, vector<64x4xf32>, vector<32x4xf32> -> vector<128x4xf32>
    %cst_9 = arith.constant 0.000000e+00 : f32
    %13 = vector.broadcast %cst_9 : f32 to vector<128x4xf32>
    %14 = arith.maximumf %12, %13 : vector<128x4xf32>
    %15 = tpu.iota {dimensions = array<i32: 1>} : vector<8x16x1xi32>
    %16 = vector.shape_cast %15 : vector<8x16x1xi32> to vector<128x1xi32>
    %c1_i32 = arith.constant 1 : i32
    %17 = tpu.dynamic_rotate %14 by %c1_i32 dim 0 : vector<128x4xf32>, i32 -> vector<128x4xf32>
    %c0_i32_10 = arith.constant 0 : i32
    %18 = vector.broadcast %c0_i32_10 : i32 to vector<128x1xi32>
    %19 = arith.cmpi eq, %16, %18 : vector<128x1xi32>
    %cst_11 = arith.constant 0.000000e+00 : f32
    %20 = vector.shape_cast %19 : vector<128x1xi1> to vector<128x1xi1>
    %21 = vector.broadcast %20 : vector<128x1xi1> to vector<128x4xi1>
    %22 = vector.broadcast %cst_11 : f32 to vector<128x4xf32>
    %23 = arith.select %21, %22, %17 : vector<128x4xi1>, vector<128x4xf32>
    %c127_i32 = arith.constant 127 : i32
    %24 = tpu.dynamic_rotate %14 by %c127_i32 dim 0 : vector<128x4xf32>, i32 -> vector<128x4xf32>
    %c15_i32 = arith.constant 15 : i32
    %25 = vector.broadcast %c15_i32 : i32 to vector<128x1xi32>
    %26 = arith.cmpi eq, %16, %25 : vector<128x1xi32>
    %cst_12 = arith.constant 0.000000e+00 : f32
    %27 = vector.shape_cast %26 : vector<128x1xi1> to vector<128x1xi1>
    %28 = vector.broadcast %27 : vector<128x1xi1> to vector<128x4xi1>
    %29 = vector.broadcast %cst_12 : f32 to vector<128x4xf32>
    %30 = arith.select %28, %29, %24 : vector<128x4xi1>, vector<128x4xf32>
    %31 = vector.extract_strided_slice %23 {offsets = [0, 0], sizes = [96, 4], strides = [1, 1]} : vector<128x4xf32> to vector<96x4xf32>
    %32 = vector.extract_strided_slice %14 {offsets = [0, 0], sizes = [96, 4], strides = [1, 1]} : vector<128x4xf32> to vector<96x4xf32>
    %33 = vector.extract_strided_slice %30 {offsets = [0, 0], sizes = [96, 4], strides = [1, 1]} : vector<128x4xf32> to vector<96x4xf32>
    %34 = vector.extract_strided_slice %23 {offsets = [16, 0], sizes = [96, 4], strides = [1, 1]} : vector<128x4xf32> to vector<96x4xf32>
    %35 = vector.extract_strided_slice %14 {offsets = [16, 0], sizes = [96, 4], strides = [1, 1]} : vector<128x4xf32> to vector<96x4xf32>
    %36 = vector.extract_strided_slice %30 {offsets = [16, 0], sizes = [96, 4], strides = [1, 1]} : vector<128x4xf32> to vector<96x4xf32>
    %37 = vector.extract_strided_slice %23 {offsets = [32, 0], sizes = [96, 4], strides = [1, 1]} : vector<128x4xf32> to vector<96x4xf32>
    %38 = vector.extract_strided_slice %14 {offsets = [32, 0], sizes = [96, 4], strides = [1, 1]} : vector<128x4xf32> to vector<96x4xf32>
    %39 = vector.extract_strided_slice %30 {offsets = [32, 0], sizes = [96, 4], strides = [1, 1]} : vector<128x4xf32> to vector<96x4xf32>
    %40 = tpu.concatenate %31, %32, %33, %34, %35, %36, %37, %38, %39 in 1 : vector<96x4xf32>, vector<96x4xf32>, vector<96x4xf32>, vector<96x4xf32>, vector<96x4xf32>, vector<96x4xf32>, vector<96x4xf32>, vector<96x4xf32>, vector<96x4xf32> -> vector<96x36xf32>
    %c0_13 = arith.constant 0 : index
    %c0_14 = arith.constant 0 : index
    %41 = vector.load %arg5[%c0_13, %c0_14] : memref<36x4xf32, #tpu.memory_space<vmem>>, vector<36x4xf32>
    %cst_15 = arith.constant dense<0.000000e+00> : vector<96x4xf32>
    %42 = tpu.matmul %40, %41, %cst_15 {dimension_numbers = #tpu.dot_dimension_numbers<[1], [0], [0], [1], [0, 0, 1, 1], [], []>} : vector<96x36xf32>, vector<36x4xf32>, vector<96x4xf32> -> vector<96x4xf32>
    %c0_16 = arith.constant 0 : index
    %c0_17 = arith.constant 0 : index
    %43 = vector.load %arg6[%c0_16, %c0_17] : memref<1x4xf32, #tpu.memory_space<vmem>>, vector<1x4xf32>
    %44 = vector.broadcast %43 : vector<1x4xf32> to vector<96x4xf32>
    %45 = arith.addf %42, %44 : vector<96x4xf32>
    %cst_18 = arith.constant 0.000000e+00 : f32
    %46 = vector.broadcast %cst_18 : f32 to vector<96x4xf32>
    %47 = arith.maximumf %45, %46 : vector<96x4xf32>
    %48 = tpu.iota {dimensions = array<i32: 0>} : vector<96x1xi32>
    %c16_i32 = arith.constant 16 : i32
    %49 = vector.broadcast %c16_i32 : i32 to vector<96x1xi32>
    %50 = arith.cmpi sge, %48, %49 : vector<96x1xi32>
    %c0_i32_19 = arith.constant 0 : i32
    %51 = arith.cmpi sgt, %arg1, %c0_i32_19 : i32
    %52 = vector.broadcast %51 : i1 to vector<96x1xi1>
    %53 = arith.ori %50, %52 : vector<96x1xi1>
    %c80_i32 = arith.constant 80 : i32
    %54 = vector.broadcast %c80_i32 : i32 to vector<96x1xi32>
    %55 = arith.cmpi slt, %48, %54 : vector<96x1xi32>
    %c3_i32_20 = arith.constant 3 : i32
    %56 = arith.cmpi slt, %arg1, %c3_i32_20 : i32
    %57 = vector.broadcast %56 : i1 to vector<96x1xi1>
    %58 = arith.ori %55, %57 : vector<96x1xi1>
    %59 = arith.andi %53, %58 : vector<96x1xi1>
    %cst_21 = arith.constant 0.000000e+00 : f32
    %60 = vector.shape_cast %59 : vector<96x1xi1> to vector<96x1xi1>
    %61 = vector.broadcast %60 : vector<96x1xi1> to vector<96x4xi1>
    %62 = vector.broadcast %cst_21 : f32 to vector<96x4xf32>
    %63 = arith.select %61, %47, %62 : vector<96x4xi1>, vector<96x4xf32>
    %64 = tpu.iota {dimensions = array<i32: 1>} : vector<6x16x1xi32>
    %65 = vector.shape_cast %64 : vector<6x16x1xi32> to vector<96x1xi32>
    %c1_i32_22 = arith.constant 1 : i32
    %66 = tpu.dynamic_rotate %63 by %c1_i32_22 dim 0 : vector<96x4xf32>, i32 -> vector<96x4xf32>
    %c0_i32_23 = arith.constant 0 : i32
    %67 = vector.broadcast %c0_i32_23 : i32 to vector<96x1xi32>
    %68 = arith.cmpi eq, %65, %67 : vector<96x1xi32>
    %cst_24 = arith.constant 0.000000e+00 : f32
    %69 = vector.shape_cast %68 : vector<96x1xi1> to vector<96x1xi1>
    %70 = vector.broadcast %69 : vector<96x1xi1> to vector<96x4xi1>
    %71 = vector.broadcast %cst_24 : f32 to vector<96x4xf32>
    %72 = arith.select %70, %71, %66 : vector<96x4xi1>, vector<96x4xf32>
    %c95_i32 = arith.constant 95 : i32
    %73 = tpu.dynamic_rotate %63 by %c95_i32 dim 0 : vector<96x4xf32>, i32 -> vector<96x4xf32>
    %c15_i32_25 = arith.constant 15 : i32
    %74 = vector.broadcast %c15_i32_25 : i32 to vector<96x1xi32>
    %75 = arith.cmpi eq, %65, %74 : vector<96x1xi32>
    %cst_26 = arith.constant 0.000000e+00 : f32
    %76 = vector.shape_cast %75 : vector<96x1xi1> to vector<96x1xi1>
    %77 = vector.broadcast %76 : vector<96x1xi1> to vector<96x4xi1>
    %78 = vector.broadcast %cst_26 : f32 to vector<96x4xf32>
    %79 = arith.select %77, %78, %73 : vector<96x4xi1>, vector<96x4xf32>
    %80 = vector.extract_strided_slice %72 {offsets = [0, 0], sizes = [64, 4], strides = [1, 1]} : vector<96x4xf32> to vector<64x4xf32>
    %81 = vector.extract_strided_slice %63 {offsets = [0, 0], sizes = [64, 4], strides = [1, 1]} : vector<96x4xf32> to vector<64x4xf32>
    %82 = vector.extract_strided_slice %79 {offsets = [0, 0], sizes = [64, 4], strides = [1, 1]} : vector<96x4xf32> to vector<64x4xf32>
    %83 = vector.extract_strided_slice %72 {offsets = [16, 0], sizes = [64, 4], strides = [1, 1]} : vector<96x4xf32> to vector<64x4xf32>
    %84 = vector.extract_strided_slice %63 {offsets = [16, 0], sizes = [64, 4], strides = [1, 1]} : vector<96x4xf32> to vector<64x4xf32>
    %85 = vector.extract_strided_slice %79 {offsets = [16, 0], sizes = [64, 4], strides = [1, 1]} : vector<96x4xf32> to vector<64x4xf32>
    %86 = vector.extract_strided_slice %72 {offsets = [32, 0], sizes = [64, 4], strides = [1, 1]} : vector<96x4xf32> to vector<64x4xf32>
    %87 = vector.extract_strided_slice %63 {offsets = [32, 0], sizes = [64, 4], strides = [1, 1]} : vector<96x4xf32> to vector<64x4xf32>
    %88 = vector.extract_strided_slice %79 {offsets = [32, 0], sizes = [64, 4], strides = [1, 1]} : vector<96x4xf32> to vector<64x4xf32>
    %89 = tpu.concatenate %80, %81, %82, %83, %84, %85, %86, %87, %88 in 1 : vector<64x4xf32>, vector<64x4xf32>, vector<64x4xf32>, vector<64x4xf32>, vector<64x4xf32>, vector<64x4xf32>, vector<64x4xf32>, vector<64x4xf32>, vector<64x4xf32> -> vector<64x36xf32>
    %c0_27 = arith.constant 0 : index
    %c0_28 = arith.constant 0 : index
    %90 = vector.load %arg7[%c0_27, %c0_28] : memref<36x4xf32, #tpu.memory_space<vmem>>, vector<36x4xf32>
    %cst_29 = arith.constant dense<0.000000e+00> : vector<64x4xf32>
    %91 = tpu.matmul %89, %90, %cst_29 {dimension_numbers = #tpu.dot_dimension_numbers<[1], [0], [0], [1], [0, 0, 1, 1], [], []>} : vector<64x36xf32>, vector<36x4xf32>, vector<64x4xf32> -> vector<64x4xf32>
    %92 = arith.addf %91, %1 : vector<64x4xf32>
    %c0_30 = arith.constant 0 : index
    %c0_31 = arith.constant 0 : index
    %c0_32 = arith.constant 0 : index
    %93 = vector.load %arg8[%c0_30, %c0_31, %c0_32] : memref<1x64x4xf32, #tpu.memory_space<vmem>>, vector<1x64x4xf32>
    %94 = vector.shape_cast %93 : vector<1x64x4xf32> to vector<64x4xf32>
    %95 = vector.shape_cast %92 : vector<64x4xf32> to vector<1x64x4xf32>
    tpu.vector_store %arg8[%c0_30, %c0_31, %c0_32], %95 {strides = array<i32>} : memref<1x64x4xf32, #tpu.memory_space<vmem>>, vector<1x64x4xf32>,
    return
  }
  func.func @transform_0(%arg0: i32, %arg1: i32) -> (i32, i32, i32) {
    %c0_i32 = arith.constant 0 : i32
    %c0_i32_0 = arith.constant 0 : i32
    return %arg0, %arg1, %c0_i32 : i32, i32, i32
  }
  func.func @transform_1(%arg0: i32, %arg1: i32) -> (i32, i32, i32) {
    %c2_i32 = arith.constant 2 : i32
    %0 = arith.muli %arg1, %c2_i32 : i32
    %c1_i32 = arith.constant 1 : i32
    %1 = arith.subi %0, %c1_i32 : i32
    %c0_i32 = arith.constant 0 : i32
    %2 = arith.maxsi %1, %c0_i32 : i32
    %c0_i32_0 = arith.constant 0 : i32
    %c0_i32_1 = arith.constant 0 : i32
    return %arg0, %2, %c0_i32_0 : i32, i32, i32
  }
  func.func @transform_2(%arg0: i32, %arg1: i32) -> (i32, i32, i32) {
    %c1_i32 = arith.constant 1 : i32
    %0 = arith.addi %arg1, %c1_i32 : i32
    %c2_i32 = arith.constant 2 : i32
    %1 = arith.muli %0, %c2_i32 : i32
    %c7_i32 = arith.constant 7 : i32
    %2 = arith.minsi %1, %c7_i32 : i32
    %c0_i32 = arith.constant 0 : i32
    %c0_i32_0 = arith.constant 0 : i32
    return %arg0, %2, %c0_i32 : i32, i32, i32
  }
  func.func @transform_3(%arg0: i32, %arg1: i32) -> (i32, i32) {
    %c0_i32 = arith.constant 0 : i32
    %c0_i32_0 = arith.constant 0 : i32
    %c0_i32_1 = arith.constant 0 : i32
    return %c0_i32, %c0_i32_0 : i32, i32
  }
  func.func @transform_4(%arg0: i32, %arg1: i32) -> (i32, i32) {
    %c0_i32 = arith.constant 0 : i32
    %c0_i32_0 = arith.constant 0 : i32
    %c0_i32_1 = arith.constant 0 : i32
    return %c0_i32, %c0_i32_0 : i32, i32
  }
  func.func @transform_5(%arg0: i32, %arg1: i32) -> (i32, i32) {
    %c0_i32 = arith.constant 0 : i32
    %c0_i32_0 = arith.constant 0 : i32
    %c0_i32_1 = arith.constant 0 : i32
    return %c0_i32, %c0_i32_0 : i32, i32
  }
  func.func @transform_6(%arg0: i32, %arg1: i32) -> (i32, i32, i32) {
    %c0_i32 = arith.constant 0 : i32
    %c0_i32_0 = arith.constant 0 : i32
    return %arg0, %arg1, %c0_i32 : i32, i32, i32
  }
}

</mosaic_0001>

<bundles_post_ra>
// kernel: tpu_custom_call.1
= control target key start
LH: loop header
LB: loop body
LE: loop exit
PB: predicated region body
PF: predicated region fallthrough
CT: control target
= control target key end

     0   :  { %s2051_s21 = smov 0   ;;  %s2053_s22 = smov 0   ;;  %s3225_s0 = inlined_call_operand.vmem [shape: f32[2,256,4], index: 0, kind: input, shape index: {}]   ;;  %s3226_s1 = inlined_call_operand.vmem [shape: f32[2,256,4], index: 1, kind: input, shape index: {}]   ;;  %s3227_s2 = inlined_call_operand.vmem [shape: f32[2,256,4], index: 2, kind: input, shape index: {}]   ;;  %s3228_s3 = inlined_call_operand.vmem [shape: f32[36,4], index: 3, kind: input, shape index: {}]   ;;  %s3229_s4 = inlined_call_operand.vmem [shape: f32[1,4], index: 4, kind: input, shape index: {}]   ;;  %s3230_s5 = inlined_call_operand.vmem [shape: f32[36,4], index: 5, kind: input, shape index: {}]   ;;  %s3231_s6 = inlined_call_operand.vmem [shape: f32[2,256,4], index: 6, kind: output, shape index: {}]  }
   0x1   :  { %s2055_s23 = smov 0   ;;  %s2057_s24 = smov 0  }
   0x2   :  { %s2059_s25 = smov 0  }
   0x3 LB: > { %s25_s26 = sadd.s32 1, %s1998_s23  ;;  %s28_s27 = sadd.s32 1, %s2002_s24  ;;  %s2006_s25 = sphi %s2059_s25, %s16_s25   ;;  %s2002_s24 = sphi %s2057_s24, %s3239_s24   ;;  %s1998_s23 = sphi %s2055_s23, %s3238_s23   ;;  %s1994_s22 = sphi %s2053_s22, %s3237_s22   ;;  %s1990_s21 = sphi %s2051_s21, %s3236_s21  }
   0x4   : > { %p26_p0 = scmp.ge.s32.totalorder %s25_s26, 4  ;;  %p1826_p1 = scmp.ge.s32.totalorder %s2006_s25, 1 }
   0x5   : > { %p299_p2 = scmp.lt.s32.totalorder %s2006_s25, 9 }
   0x6   : > { %s3241_s26 = smov (%p26_p0, %s25_s26), 0  ;;  %s3243_s27 = smov (!%p26_p0, %s28_s27), %s2002_s24 }
   0x7   : > { %p300_p3 = pnand %p1826_p1, %p299_p2  ;;  %p30_p4 = scmp.ge.s32.totalorder %s3243_s27, 2 }
   0x8   : > { %s1827_s28 = sshll.u32 (!%p300_p3), %s1990_s21, 3  ;;  %p364_p5 = scmp.lt.s32.totalorder (!%p300_p3), %s1994_s22, 1 }
   0x9   : > { %s3245_s27 = smov (%p30_p4, %s3243_s27), 0  ;;  %303 = sbr.rel (%p300_p3) target bundleno = 854 (0x356), region = 44 }
   0xa   : > { %p366_p6 = scmp.lt.s32.totalorder (!%p300_p3), %s1827_s28, 31  ;;  %s1830_s30 = sshll.u32 (!%p300_p3), %s1990_s21, 1 }
   0xb   : > { %s1831_s8 = sadd.s32 (!%p300_p3), 4294967295, %s1830_s30  ;;  %s1871_s13 = sadd.s32 (!%p300_p3), 2, %s1830_s30 }
   0xc   : > { %p375_p7 = scmp.gt.s32.totalorder (!%p300_p3), %s1831_s8, 0  ;;  %p393_p8 = scmp.lt.s32.totalorder (!%p300_p3), %s1871_s13, 7 }
   0xd   : > { %s2008_s15 = smov (!%p300_p3), 4   ;;  %p427_p10 = scmp.eq.s32.totalorder (!%p300_p3), %s1990_s21, 0 }
   0xe   : > { %s3247_s22 = smov (!%p364_p5, %s1994_s22), 1  ;;  %s3249_s28 = smov (!%p366_p6, %s1827_s28), 31  ;;  %v467_v17 = vlaneseq  ;;  %vm914_vm4 = vcmask 31744   ;;  %vm927_vm5 = vcmask 64512   ;;  %vm1064_vm6 = vcmask 1043456  }
   0xf   : > { %s2084_s29 = sshll.u32 %s3247_s22, 5  ;;  %s3251_s8 = smov (!%p375_p7, %s1831_s8), 0  ;;  %vm940_vm7 = vcmask 97280   ;;  %vm953_vm8 = vcmask 130048   ;;  %vm966_vm9 = vcmask 162816   ;;  %vm979_vm10 = vcmask 195584  }
  0x10   : > { %s369_s7 = sadd.s32 %s2084_s29, %s3249_s28  ;;  %s1832_s14 = sshll.u32 %s3251_s8, 2  ;;  %v2145_v21 = vshrl.u32 %v467_v17, 7  ;;  %vm992_vm11 = vcmask 228352   ;;  %vm1005_vm12 = vcmask 261120   ;;  %vm1027_vm13 = vcmask 293888  }
  0x11   : > { %s2088_s9 = sshll.u32 %s369_s7, 3  ;;  %p380_p9 = scmp.lt.s32.totalorder %s1832_s14, 31 }
  0x12   : > { %s2094_s12 = scalar_lea.vmem %s3225_s0, %s2088_s9  ;;  %s3253_s13 = smov (!%p393_p8, %s1871_s13), 7  ;;  %vm541_vm0 = vcmp.lt.s32.totalorder %v2145_v21, 7  ;;  %v2163_v28 = vadd.s32 8, %v2145_v21  ;;  %vm486_vm2 = vcmp.lt.s32.totalorder %v2145_v21, 1  ;;  %vm503_vm3 = vcmp.eq.s32.totalorder %v2145_v21, 0 }
  0x13   : > { %v422_v0 = vld [vmem:[%s2094_s12 + $0x18] sm:$0xff]  ;;  %v421_v1 = vld [vmem:[%s2094_s12 + $0x10] sm:$0xff]  ;;  %v419_v2 = vld [vmem:[%s2094_s12] sm:$0xff]  ;;  %s3255_s14 = smov (!%p380_p9, %s1832_s14), 31  ;;  %s1836_s18 = sshll.u32 %s3253_s13, 2 }
  0x14   : > { %v2099_v3 = vmax.f32 %v422_v0, 0.0  ;;  %v2101_v4 = vmax.f32 %v421_v1, 0.0  ;;  %v2103_v5 = vmax.f32 %v419_v2, 0.0  ;;  %v420_v6 = vld [vmem:[%s2094_s12 + $0x8] sm:$0xff]  ;;  %s383_s16 = sadd.s32 %s2084_s29, %s3255_s14  ;;  %p398_p11 = scmp.lt.s32.totalorder %s1836_s18, 31  ;;  %v423_v8 = vld [vmem:[%s2094_s12 + $0x20] sm:$0xff] }
  0x15   : > { %s1834_s17 = sshll.u32 %s383_s16, 3  ;;  %v2114_v7 = vmax.f32 %v420_v6, 0.0  ;;  %v2122_v10 = vmax.f32 %v423_v8, 0.0  ;;  %v426_v16 = vld [vmem:[%s2094_s12 + $0x38] sm:$0xff]  ;;  %v425_v22 = vld [vmem:[%s2094_s12 + $0x30] sm:$0xff]  ;;  %v424_v23 = vld [vmem:[%s2094_s12 + $0x28] sm:$0xff] }
  0x16   : > { %606 = vrot.lane.b32.xlu1 %v2099_v3, %s2008_s15  ;;  %604 = vrot.lane.b32.xlu0 %v2101_v4, %s2008_s15  ;;  %s385_s22 = scalar_lea.vmem %s3226_s1, %s1834_s17  ;;  %s3257_s18 = smov (!%p398_p11, %s1836_s18), 31  ;;  %v2143_v20 = vmax.f32 %v426_v16, 0.0  ;;  %v2158_v26 = vmax.f32 %v425_v22, 0.0  ;;  %v2160_v27 = vmax.f32 %v424_v23, 0.0  ;;  %v531_v32 = vrot.slane %v2101_v4, 1 }
  0x17   : > { %600 = vrot.lane.b32.xlu2 %v2103_v5, %s2008_s15  ;;  %s1936_s28 = scalar_select %p427_p10, 0, 255  ;;  %v530_v31 = vrot.slane %v2114_v7, 1  ;;  %vm559_vm1 = vcmp.eq.s32.totalorder %v2163_v28, 15  ;;  %v529_v39 = vrot.slane %v2103_v5, 1  ;;  %v533_v40 = vrot.slane %v2122_v10, 1 }
  0x18   : > { %s401_s30 = sadd.s32 %s2084_s29, %s3257_s18  ;;  %s2009_s7 = smov 8   ;;  %v534_v41 = vrot.slane %v2160_v27, 1  ;;  %v532_v46 = vrot.slane %v2099_v3, 1  ;;  %v535_v54 = vrot.slane %v2158_v26, 1  ;;  %v474_v56 = vrot.slane %v2103_v5, 7 }
  0x19   : > { %v1937_v9 = vld [vmem:[%s385_s22 + $0x10] sm:%s1936_s28]  ;;  %v1940_v12 = vld [vmem:[%s385_s22] sm:%s1936_s28]  ;;  %v551_v35 = vsel %vm541_vm0, %v530_v31, %v531_v32  ;;  %v2202_v43 = vsel %vm541_vm0, %v529_v39, %v530_v31  ;;  %s2010_s8 = smov 12   ;;  %v536_v57 = vrot.slane %v2143_v20, 1  ;;  %s2011_s10 = smov 24   ;;  %v476_v63 = vrot.slane %v2101_v4, 7 }
  0x1a   : > { %v2124_v11 = vmax.f32 %v1937_v9, 0.0  ;;  %v2126_v13 = vmax.f32 %v1940_v12, 0.0  ;;  %v1943_v14 = vld [vmem:[%s385_s22 + $0x18] sm:%s1936_s28]  ;;  %v1946_v15 = vld [vmem:[%s385_s22 + $0x8] sm:%s1936_s28]  ;;  %v2189_v38 = vsel %vm559_vm1, 0.0, %v551_v35  ;;  %v2208_v45 = vsel %vm541_vm0, %v533_v40, %v534_v41  ;;  %s2012_s11 = smov 20  }
  0x1b   : > { %v2139_v18 = vmax.f32 %v1943_v14, 0.0  ;;  %v2141_v19 = vmax.f32 %v1946_v15, 0.0  ;;  %v549_v49 = vsel %vm541_vm0, %v532_v46, %v533_v40  ;;  %v2232_v52 = vsel %vm541_vm0, %v531_v32, %v532_v46  ;;  %s2013_s13 = smov 16   ;;  %s2014_s14 = smov 32  }
  0x1c   : > { %v527_v24 = vrot.slane %v2124_v11, 1  ;;  %v525_v34 = vrot.slane %v2126_v13, 1  ;;  %v472_v48 = vrot.slane %v2124_v11, 7  ;;  %v2228_v51 = vsel %vm559_vm1, 0.0, %v549_v49  ;;  %s2015_s16 = smov 28   ;;  %p439_p12 = scmp.eq.s32.totalorder %s1990_s21, 3 }
  0x1d   : > { %v528_v25 = vrot.slane %v2139_v18, 1  ;;  %v526_v29 = vrot.slane %v2141_v19, 1  ;;  %v471_v47 = vrot.slane %v2141_v19, 7  ;;  %v473_v55 = vrot.slane %v2139_v18, 7  ;;  %s1838_s17 = sshll.u32 %s401_s30, 3  ;;  %p1155_p13 = scmp.gt.s32.totalorder %s1990_s21, 0 }
  0x1e   : > { %596 = vrot.lane.b32.xlu1 %v2124_v11, %s2008_s15  ;;  %592 = vrot.lane.b32.xlu0 %v2126_v13, %s2008_s15  ;;  %v547_v58 = vsel %vm541_vm0, %v534_v41, %v535_v54  ;;  %v2256_v60 = vsel %vm541_vm0, %v535_v54, %v536_v57  ;;  %v477_v0 = vrot.slane %v2099_v3, 7  ;;  %v478_v6 = vrot.slane %v2122_v10, 7  ;;  %s2404_s19 = scalar_select %p439_p12, 0, 255 }
  0x1f   : > { %602 = vrot.lane.b32.xlu2 %v2114_v7, %s2008_s15  ;;  %v554_v30 = vsel %vm541_vm0, %v527_v24, %v528_v25  ;;  %v555_v33 = vsel %vm541_vm0, %v526_v29, %v527_v24  ;;  %v556_v37 = vsel %vm541_vm0, %v525_v34, %v526_v29  ;;  %v553_v42 = vsel %vm541_vm0, %v528_v25, %v529_v39  ;;  %s2410_s28 = scalar_lea.vmem %s3227_s2, %s1838_s17  ;;  %p1183_p0 = scmp.lt.s32.totalorder %s1990_s21, 3 }
  0x20   : > { %v565_v36 = vsel %vm559_vm1, 0.0, %v555_v33  ;;  %v567_v44 = vsel %vm559_vm1, 0.0, %v553_v42  ;;  %v500_v50 = vsel %vm486_vm2, %v471_v47, %v472_v48  ;;  %v498_v59 = vsel %vm486_vm2, %v473_v55, %v474_v56 }
  0x21   : > { %v2236_v53 = vsel %vm503_vm3, 0.0, %v500_v50  ;;  %v2260_v61 = vsel %vm559_vm1, 0.0, %v547_v58  ;;  %v2264_v62 = vsel %vm503_vm3, 0.0, %v498_v59  ;;  %v2281_v1 = vsel %vm486_vm2, %v476_v63, %v477_v0  ;;  %v1021_v58 = vld [vmem:[%s3228_s3 + $0x18] sm:$0xff]  ;;  %s1184_s22 = scalar_select %p1183_p0, 1, 0 }
  0x22   : > { %v2285_v2 = vsel %vm486_vm2, %v472_v48, %v473_v55  ;;  %v479_v8 = vrot.slane %v2160_v27, 7  ;;  %v475_v9 = vrot.slane %v2114_v7, 7  ;;  %v494_v16 = vsel %vm486_vm2, %v477_v0, %v478_v6  ;;  %v1952_v48 = vld [vmem:[%s2410_s28] sm:%s2404_s19]  ;;  %v1019_v0 = vld [vmem:[%s3228_s3 + $0x8] sm:$0xff] }
  0x23   : > { %v480_v23 = vrot.slane %v2158_v26, 7  ;;  %v2427_v50 = vmax.f32 %v1952_v48, 0.0 }
  0x24   : > { %v2307_v12 = vsel %vm486_vm2, %v478_v6, %v479_v8  ;;  %v2311_v14 = vsel %vm486_vm2, %v474_v56, %v475_v9  ;;  %v496_v31 = vsel %vm486_vm2, %v475_v9, %v476_v63  ;;  %v481_v56 = vrot.slane %v2143_v20, 7 }
  0x25   : > { %v492_v29 = vsel %vm486_vm2, %v479_v8, %v480_v23  ;;  %v2365_v33 = vsel %vm503_vm3, 0.0, %v496_v31  ;;  %v537_v59 = vrot.slane %v2427_v50, 1 }
  0x26   : > { %598 = vrot.lane.b32.xlu1 %v2139_v18, %s2008_s15  ;;  %594 = vrot.lane.b32.xlu0 %v2141_v19, %s2008_s15  ;;  %v2361_v32 = vsel %vm503_vm3, 0.0, %v492_v29  ;;  %v2454_v63 = vsel %vm486_vm2, %v480_v23, %v481_v56 }
  0x27   : > { %608 = vrot.lane.b32.xlu2 %v2122_v10, %s2008_s15 }
  0x2e   : > { %612 = vrot.lane.b32.xlu1 %v2158_v26, %s2008_s15  ;;  %610 = vrot.lane.b32.xlu0 %v2160_v27, %s2008_s15 }
  0x2f   : > { %614 = vrot.lane.b32.xlu2 %v2143_v20, %s2008_s15 }
  0x36   : > { %642 = vrot.lane.b32.xlu1 %v565_v36, %s2009_s7  ;;  %640 = vrot.lane.b32.xlu0 %v556_v37, %s2009_s7 }
  0x37   : > { %644 = vrot.lane.b32.xlu2 %v554_v30, %s2009_s7 }
  0x3e   : > { %648 = vrot.lane.b32.xlu1 %v2202_v43, %s2009_s7  ;;  %646 = vrot.lane.b32.xlu0 %v567_v44, %s2009_s7 }
  0x3f   : > { %650 = vrot.lane.b32.xlu2 %v2189_v38, %s2009_s7 }
  0x46   : > { %654 = vrot.lane.b32.xlu1 %v2228_v51, %s2009_s7  ;;  %652 = vrot.lane.b32.xlu0 %v2232_v52, %s2009_s7 }
  0x47   : > { %656 = vrot.lane.b32.xlu2 %v2208_v45, %s2009_s7 }
  0x4e   : > { %660 = vrot.lane.b32.xlu1 %v2256_v60, %s2009_s7  ;;  %658 = vrot.lane.b32.xlu0 %v2260_v61, %s2009_s7 }
  0x4f   : > { %688 = vrot.lane.b32.xlu2 %v2236_v53, %s2010_s8 }
  0x56   : > { %764 = vrot.lane.b32.xlu1 %v554_v30, %s2012_s11  ;;  %726 = vrot.lane.b32.xlu0 %v2124_v11, %s2013_s13 }
  0x57   : > { %802 = vrot.lane.b32.xlu2 %v2264_v62, %s2011_s10 }
  0x5e   : > { %698 = vrot.lane.b32.xlu1 %v2281_v1, %s2010_s8  ;;  %840 = vrot.lane.b32.xlu0 %v2103_v5, %s2015_s16 }
  0x5f   : > { %878 = vrot.lane.b32.xlu2 %v2202_v43, %s2014_s14 }
  0x66   : > { %774 = vrot.lane.b32.xlu1 %v2228_v51, %s2012_s11  ;;  %736 = vrot.lane.b32.xlu0 %v2099_v3, %s2013_s13 }
  0x67   : > { %690 = vrot.lane.b32.xlu2 %v2285_v2, %s2010_s8 }
  0x6e   : > { %728 = vrot.lane.b32.xlu1 %v2139_v18, %s2013_s13  ;;  %812 = vrot.lane.b32.xlu0 %v2307_v12, %s2011_s10  ;;  %v2332_v18 = vsel %vm503_vm3, 0.0, %v494_v16 }
  0x6f   : > { %850 = vrot.lane.b32.xlu2 %v2160_v27, %s2015_s16 }
  0x71   : > { %v2302_v11 = vpop.permute.xlu2 %600 }
  0x72   : > { %v919_v6 = vsel %vm914_vm4, %v2264_v62, %v2302_v11 }
  0x76   : > { %888 = vrot.lane.b32.xlu1 %v2260_v61, %s2014_s14  ;;  %766 = vrot.lane.b32.xlu0 %v567_v44, %s2012_s11  ;;  %v470_v44 = vrot.slane %v2126_v13, 7 }
  0x77   : > { %804 = vrot.lane.b32.xlu2 %v2311_v14, %s2011_s10 }
  0x78   : > { %v501_v46 = vsel %vm486_vm2, %v470_v44, %v471_v47 }
  0x79   : > { %v2319_v15 = vpop.permute.xlu2 %602 }
  0x7e   : > { %700 = vrot.lane.b32.xlu1 %v2332_v18, %s2010_s8  ;;  %842 = vrot.lane.b32.xlu0 %v2114_v7, %s2015_s16 }
  0x7f   : > { %880 = vrot.lane.b32.xlu2 %v2189_v38, %s2014_s14 }
  0x81   : > { %v2328_v17 = vpop.permute.xlu2 %608 }
  0x86   : > { %776 = vrot.lane.b32.xlu1 %v2208_v45, %s2012_s11  ;;  %738 = vrot.lane.b32.xlu0 %v2122_v10, %s2013_s13 }
  0x87   : > { %692 = vrot.lane.b32.xlu2 %v2264_v62, %s2010_s8 }
  0x88   : > { %v2345_v24 = vpop.permute.xlu1 %606  ;;  %v2349_v25 = vpop.permute.xlu0 %604 }
  0x89   : > { %v2340_v22 = vpop.permute.xlu2 %614 }
  0x8e   : > { %730 = vrot.lane.b32.xlu1 %v2103_v5, %s2013_s13  ;;  %814 = vrot.lane.b32.xlu0 %v2361_v32, %s2011_s10 }
  0x8f   : > { %852 = vrot.lane.b32.xlu2 %v2158_v26, %s2015_s16 }
  0x90   : > { %v2373_v35 = vpop.permute.xlu1 %596  ;;  %v2375_v36 = vpop.permute.xlu0 %592 }
  0x91   : > { %v2355_v30 = vpop.permute.xlu2 %644 }
  0x96   : > { %890 = vrot.lane.b32.xlu1 %v2256_v60, %s2014_s14  ;;  %768 = vrot.lane.b32.xlu0 %v2202_v43, %s2012_s11 }
  0x97   : > { %806 = vrot.lane.b32.xlu2 %v2365_v33, %s2011_s10 }
  0x98   : > { %v599_v5 = vpop.permute.xlu1 %598  ;;  %v595_v39 = vpop.permute.xlu0 %594 }
  0x99   : > { %v2377_v37 = vpop.permute.xlu2 %650  ;;  %v916_v19 = vsel %vm914_vm4, %v501_v46, %v595_v39  ;;  %v918_v9 = vsel %vm914_vm4, %v2285_v2, %v599_v5  ;;  %v1949_v2 = vld [vmem:[%s2410_s28 + $0x18] sm:%s2404_s19]  ;;  %v921_v39 = vsel %vm914_vm4, %v2365_v33, %v2349_v25 }
  0x9a   : > { %v2499_v31 = vmax.f32 %v1949_v2, 0.0 }
  0x9e   : > { %702 = vrot.lane.b32.xlu1 %v2307_v12, %s2010_s8  ;;  %844 = vrot.lane.b32.xlu0 %v2101_v4, %s2015_s16 }
  0x9f   : > { %882 = vrot.lane.b32.xlu2 %v2232_v52, %s2014_s14 }
  0xa0   : > { %v2396_v41 = vpop.permute.xlu1 %612  ;;  %v2398_v42 = vpop.permute.xlu0 %610 }
  0xa1   : > { %v2385_v40 = vpop.permute.xlu2 %656 }
  0xa6   : > { %778 = vrot.lane.b32.xlu1 %v2260_v61, %s2012_s11  ;;  %740 = vrot.lane.b32.xlu0 %v2160_v27, %s2013_s13  ;;  %v1022_v27 = vld [vmem:[%s3228_s3 + $0x20] sm:$0xf]  ;;  %v1020_v61 = vld [vmem:[%s3228_s3 + $0x10] sm:$0xff] }
  0xa7   : > { %694 = vrot.lane.b32.xlu2 %v2311_v14, %s2010_s8  ;;  %1842 = vmatpush.msk.msra.mxu0 %vm1064_vm6, %v1022_v27 }
  0xa8   : > { %v643_v49 = vpop.permute.xlu1 %642  ;;  %v2432_v47 = vpop.permute.xlu0 %640  ;;  %1872 = vmatpush.msk.msra.mxu2 %vm1064_vm6, %v1022_v27  ;;  %1873 = vmatpush.msk.msra.mxu3 %vm1064_vm6, %v1022_v27 }
  0xa9   : > { %v2400_v43 = vpop.permute.xlu2 %688  ;;  %v2430_v54 = vsel %vm927_vm5, %v916_v19, %v643_v49  ;;  %1080 = vmatpush.msra.mxu0 %v1021_v58  ;;  %v485_v49 = vrot.slane %v2499_v31, 7 }
  0xaa   : > { %1874 = vmatpush.msra.mxu2 %v1021_v58  ;;  %1875 = vmatpush.msra.mxu3 %v1021_v58 }
  0xab   : > { %1081 = vmatpush.msra.mxu0 %v1020_v61 }
  0xac   : > { %1876 = vmatpush.msra.mxu2 %v1020_v61  ;;  %1877 = vmatpush.msra.mxu3 %v1020_v61 }
  0xad   : > { %1082 = vmatpush.msra.mxu0 %v1019_v0 }
  0xae   : > { %732 = vrot.lane.b32.xlu1 %v2114_v7, %s2013_s13  ;;  %816 = vrot.lane.b32.xlu0 %v2454_v63, %s2011_s10  ;;  %v545_v7 = vsel %vm541_vm0, %v536_v57, %v537_v59  ;;  %v1018_v57 = vld [vmem:[%s3228_s3] sm:$0xff] }
  0xaf   : > { %854 = vrot.lane.b32.xlu2 %v2143_v20, %s2015_s16  ;;  %1878 = vmatpush.msra.mxu2 %v1019_v0  ;;  %v2489_v29 = vsel %vm559_vm1, 0.0, %v545_v7 }
  0xb0   : > { %v649_v8 = vpop.permute.xlu1 %648  ;;  %v647_v16 = vpop.permute.xlu0 %646  ;;  %1879 = vmatpush.msra.mxu3 %v1019_v0  ;;  %1083 = vmatpush.msra.mxu0 %v1018_v57  ;;  %v1955_v0 = vld [vmem:[%s2410_s28 + $0x8] sm:%s2404_s19] }
  0xb1   : > { %v2434_v55 = vpop.permute.xlu2 %802  ;;  %v2477_v23 = vsel %vm927_vm5, %v919_v6, %v649_v8  ;;  %v2482_v11 = vsel %vm927_vm5, %v918_v9, %v647_v16  ;;  %1880 = vmatpush.msra.mxu2 %v1018_v57 }
  0xb2   : > { %1881 = vmatpush.msra.mxu3 %v1018_v57 }
  0xb6   : > { %892 = vrot.lane.b32.xlu1 %v2489_v29, %s2014_s14  ;;  %770 = vrot.lane.b32.xlu0 %v2189_v38, %s2012_s11  ;;  %v502_v38 = vsel %vm486_vm2, %v485_v49, %v470_v44 }
  0xb7   : > { %808 = vrot.lane.b32.xlu2 %v2281_v1, %s2011_s10  ;;  %v509_v44 = vsel %vm503_vm3, 0.0, %v502_v38 }
  0xb8   : > { %v2501_v5 = vpop.permute.xlu1 %654  ;;  %v653_v46 = vpop.permute.xlu0 %652 }
  0xb9   : > { %v2479_v62 = vpop.permute.xlu2 %878  ;;  %v2509_v19 = vsel %vm927_vm5, %v921_v39, %v653_v46 }
  0xbe   : > { %704 = vrot.lane.b32.xlu1 %v2361_v32, %s2010_s8  ;;  %846 = vrot.lane.b32.xlu0 %v2099_v3, %s2015_s16  ;;  %v924_v3 = vsel %vm914_vm4, %v2307_v12, %v2398_v42 }
  0xbf   : > { %884 = vrot.lane.b32.xlu2 %v2228_v51, %s2014_s14  ;;  %v925_v51 = vsel %vm914_vm4, %v2361_v32, %v2396_v41  ;;  %v482_v32 = vrot.slane %v2427_v50, 7  ;;  %v915_v41 = vsel %vm914_vm4, %v509_v44, %v2375_v36 }
  0xc0   : > { %v661_v25 = vpop.permute.xlu1 %660  ;;  %v659_v27 = vpop.permute.xlu0 %658  ;;  %v928_v12 = vsel %vm927_vm5, %v915_v41, %v2432_v47 }
  0xc1   : > { %v2506_v48 = vpop.permute.xlu2 %690  ;;  %v2536_v61 = vsel %vm927_vm5, %v924_v3, %v659_v27  ;;  %v490_v36 = vsel %vm486_vm2, %v481_v56, %v482_v32  ;;  %v941_v47 = vsel %vm940_vm7, %v928_v12, %v2400_v43 }
  0xc2   : > { %v521_v7 = vsel %vm503_vm3, 0.0, %v490_v36 }
  0xc6   : > { %780 = vrot.lane.b32.xlu1 %v2256_v60, %s2012_s11  ;;  %742 = vrot.lane.b32.xlu0 %v2158_v26, %s2013_s13  ;;  %v2562_v26 = vmax.f32 %v1955_v0, 0.0 }
  0xc7   : > { %696 = vrot.lane.b32.xlu2 %v2365_v33, %s2010_s8  ;;  %v2531_v33 = vsel %vm927_vm5, %v925_v51, %v661_v25 }
  0xc8   : > { %v765_v42 = vpop.permute.xlu1 %764  ;;  %v727_v6 = vpop.permute.xlu0 %726  ;;  %v538_v56 = vrot.slane %v2562_v26, 1  ;;  %v483_v3 = vrot.slane %v2562_v26, 7 }
  0xc9   : > { %v2533_v58 = vpop.permute.xlu2 %850  ;;  %v954_v8 = vsel %vm953_vm8, %v941_v47, %v727_v6 }
  0xca   : > { %v967_v9 = vsel %vm966_vm9, %v954_v8, %v765_v42  ;;  %v544_v46 = vsel %vm541_vm0, %v537_v59, %v538_v56 }
  0xcb   : > { %v980_v57 = vsel %vm979_vm10, %v967_v9, %v2434_v55 }
  0xce   : > { %734 = vrot.lane.b32.xlu1 %v2101_v4, %s2013_s13  ;;  %818 = vrot.lane.b32.xlu0 %v521_v7, %s2011_s10 }
  0xcf   : > { %856 = vrot.lane.b32.xlu2 %v2427_v50, %s2015_s16 }
  0xd0   : > { %v699_v43 = vpop.permute.xlu1 %698  ;;  %v841_v16 = vpop.permute.xlu0 %840 }
  0xd1   : > { %v2557_v60 = vpop.permute.xlu2 %804  ;;  %v993_v39 = vsel %vm992_vm11, %v980_v57, %v841_v16 }
  0xd2   : > { %v1006_v4 = vsel %vm1005_vm12, %v993_v39, %v2479_v62  ;;  %v920_v62 = vsel %vm914_vm4, %v2311_v14, %v2319_v15 }
  0xd3   : > { %1843 = vmatmul.msk.f32.vlgmr.msra.gmra.mxu0 %vm1027_vm13, %v1006_v4  ;;  %v933_v59 = vsel %vm927_vm5, %v920_v62, %v2377_v37  ;;  %v489_v37 = vsel %vm486_vm2, %v482_v32, %v483_v3 }
  0xd6   : > { %894 = vrot.lane.b32.xlu1 %v544_v46, %s2014_s14  ;;  %772 = vrot.lane.b32.xlu0 %v2232_v52, %s2012_s11  ;;  %v946_v52 = vsel %vm940_vm7, %v933_v59, %v699_v43 }
  0xd7   : > { %810 = vrot.lane.b32.xlu2 %v2332_v18, %s2011_s10 }
  0xd8   : > { %v775_v55 = vpop.permute.xlu1 %774  ;;  %v737_v38 = vpop.permute.xlu0 %736 }
  0xd9   : > { %v881_v2 = vpop.permute.xlu2 %880  ;;  %v959_v27 = vsel %vm953_vm8, %v946_v52, %v737_v38 }
  0xda   : > { %v972_v44 = vsel %vm966_vm9, %v959_v27, %v775_v55 }
  0xde   : > { %706 = vrot.lane.b32.xlu1 %v2454_v63, %s2010_s8  ;;  %848 = vrot.lane.b32.xlu0 %v2122_v10, %s2015_s16  ;;  %v1958_v10 = vld [vmem:[%s2410_s28 + $0x10] sm:%s2404_s19]  ;;  %s1156_s19 = scalar_select %p1155_p13, 1, 0 }
  0xdf   : > { %708 = vrot.lane.b32.xlu2 %v521_v7, %s2010_s8  ;;  %v465_v6 = vmax.f32 %v1958_v10, 0.0 }
  0xe0   : > { %v729_v25 = vpop.permute.xlu1 %728  ;;  %v813_v14 = vpop.permute.xlu0 %812 }
  0xe1   : > { %v2589_v51 = vpop.permute.xlu2 %692  ;;  %v985_v41 = vsel %vm979_vm10, %v972_v44, %v813_v14  ;;  %v539_v16 = vrot.slane %v465_v6, 1 }
  0xe2   : > { %v998_v12 = vsel %vm992_vm11, %v985_v41, %v2533_v58 }
  0xe6   : > { %744 = vrot.lane.b32.xlu1 %v2143_v20, %s2013_s13  ;;  %886 = vrot.lane.b32.xlu0 %v2208_v45, %s2014_s14  ;;  %v942_v20 = vsel %vm940_vm7, %v2430_v54, %v2506_v48  ;;  %v484_v45 = vrot.slane %v465_v6, 7 }
  0xe7   : > { %746 = vrot.lane.b32.xlu2 %v2427_v50, %s2013_s13  ;;  %v955_v36 = vsel %vm953_vm8, %v942_v20, %v729_v25 }
  0xe8   : > { %v889_v50 = vpop.permute.xlu1 %888  ;;  %v767_v42 = vpop.permute.xlu0 %766  ;;  %v488_v54 = vsel %vm486_vm2, %v483_v3, %v484_v45 }
  0xe9   : > { %v853_v15 = vpop.permute.xlu2 %852  ;;  %v1011_v0 = vsel %vm1005_vm12, %v998_v12, %v889_v50  ;;  %v968_v47 = vsel %vm966_vm9, %v955_v36, %v767_v42  ;;  %v523_v43 = vsel %vm503_vm3, 0.0, %v488_v54 }
  0xea   : > { %1848 = vmatmul.msk.f32.vlgmr.msra.gmra.mxu2 %vm1027_vm13, %v1011_v0  ;;  %v981_v7 = vsel %vm979_vm10, %v968_v47, %v2557_v60  ;;  %v540_v60 = vrot.slane %v2499_v31, 1 }
  0xec   : > { %v557_v3 = vsel %vm541_vm0, %v540_v60, %v525_v34 }
  0xed   : > { %v579_v44 = vsel %vm559_vm1, 0.0, %v557_v3 }
  0xee   : > { %784 = vrot.lane.b32.xlu1 %v544_v46, %s2012_s11  ;;  %782 = vrot.lane.b32.xlu0 %v2489_v29, %s2012_s11  ;;  %v542_v46 = vsel %vm541_vm0, %v539_v16, %v540_v60 }
  0xef   : > { %820 = vrot.lane.b32.xlu2 %v489_v37, %s2011_s10 }
  0xf0   : > { %v701_v58 = vpop.permute.xlu1 %700  ;;  %v843_v8 = vpop.permute.xlu0 %842 }
  0xf1   : > { %v807_v32 = vpop.permute.xlu2 %806  ;;  %v994_v48 = vsel %vm992_vm11, %v981_v7, %v843_v8 }
  0xf2   : > { %v1007_v9 = vsel %vm1005_vm12, %v994_v48, %v881_v2  ;;  %v543_v2 = vsel %vm541_vm0, %v538_v56, %v539_v16 }
  0xf3   : > { %1844 = vmatmul.msk.f32.gmra.mxu0 %vm1027_vm13, %v1007_v9  ;;  %v577_v55 = vsel %vm559_vm1, 0.0, %v543_v2 }
  0xf6   : > { %858 = vrot.lane.b32.xlu1 %v2562_v26, %s2015_s16  ;;  %822 = vrot.lane.b32.xlu0 %v523_v43, %s2011_s10 }
  0xf7   : > { %860 = vrot.lane.b32.xlu2 %v465_v6, %s2015_s16  ;;  %v922_v6 = vsel %vm914_vm4, %v2281_v1, %v2345_v24 }
  0xf8   : > { %v777_v39 = vpop.permute.xlu1 %776  ;;  %v739_v4 = vpop.permute.xlu0 %738  ;;  %v935_v20 = vsel %vm927_vm5, %v922_v6, %v2501_v5 }
  0xf9   : > { %v883_v57 = vpop.permute.xlu2 %882 }
  0xfe   : > { %898 = vrot.lane.b32.xlu1 %v542_v46, %s2014_s14  ;;  %896 = vrot.lane.b32.xlu0 %v577_v55, %s2014_s14 }
  0xff   : > { %662 = vrot.lane.b32.xlu2 %v2489_v29, %s2009_s7  ;;  %v947_v29 = vsel %vm940_vm7, %v2509_v19, %v701_v58  ;;  %v917_v19 = vsel %vm914_vm4, %v2236_v53, %v2373_v35  ;;  %v487_v53 = vsel %vm486_vm2, %v484_v45, %v485_v49 }
 0x100   : > { %v731_v38 = vpop.permute.xlu1 %730  ;;  %v960_v59 = vsel %vm953_vm8, %v947_v29, %v739_v4  ;;  %v815_v56 = vpop.permute.xlu0 %814  ;;  %v930_v13 = vsel %vm927_vm5, %v917_v19, %v2355_v30 }
 0x101   : > { %v695_v62 = vpop.permute.xlu2 %694  ;;  %v973_v52 = vsel %vm966_vm9, %v960_v59, %v777_v39  ;;  %v943_v34 = vsel %vm940_vm7, %v930_v13, %v2589_v51 }
 0x102   : > { %v986_v25 = vsel %vm979_vm10, %v973_v52, %v815_v56  ;;  %v956_v35 = vsel %vm953_vm8, %v943_v34, %v731_v38  ;;  %v944_v24 = vsel %vm940_vm7, %v2482_v11, %v695_v62  ;;  %v923_v11 = vsel %vm914_vm4, %v2332_v18, %v2328_v17 }
 0x103   : > { %v999_v14 = vsel %vm992_vm11, %v986_v25, %v853_v15  ;;  %v936_v38 = vsel %vm927_vm5, %v923_v11, %v2385_v40  ;;  %v2729_v40 = vld [vmem:[%s3229_s4] ss:$0 sm:$0xff] }
 0x106   : > { %748 = vrot.lane.b32.xlu1 %v2562_v26, %s2013_s13  ;;  %710 = vrot.lane.b32.xlu0 %v489_v37, %s2010_s8 }
 0x107   : > { %786 = vrot.lane.b32.xlu2 %v577_v55, %s2012_s11 }
 0x108   : > { %v891_v27 = vpop.permute.xlu1 %890  ;;  %v769_v41 = vpop.permute.xlu0 %768 }
 0x109   : > { %v1012_v26 = vsel %vm1005_vm12, %v999_v14, %v891_v27  ;;  %v855_v37 = vpop.permute.xlu2 %854  ;;  %v969_v15 = vsel %vm966_vm9, %v956_v35, %v769_v41 }
 0x10a   : > { %1849 = vmatmul.msk.f32.gmra.mxu2 %vm1027_vm13, %v1012_v26  ;;  %v982_v30 = vsel %vm979_vm10, %v969_v15, %v807_v32  ;;  %v1157_v26 = vstv %s1156_s19 }
 0x10b   : > { %vm2734_vm14 = vcmp.eq.s32.totalorder %v1157_v26, 1 }
 0x10e   : > { %862 = vrot.lane.b32.xlu1 %v2499_v31, %s2015_s16  ;;  %824 = vrot.lane.b32.xlu0 %v487_v53, %s2011_s10 }
 0x10f   : > { %900 = vrot.lane.b32.xlu2 %v579_v44, %s2014_s14 }
 0x110   : > { %v703_v10 = vpop.permute.xlu1 %702  ;;  %v845_v50 = vpop.permute.xlu0 %844 }
 0x111   : > { %v995_v51 = vsel %vm992_vm11, %v982_v30, %v845_v50  ;;  %v809_v42 = vpop.permute.xlu2 %808  ;;  %v948_v36 = vsel %vm940_vm7, %v935_v20, %v703_v10 }
 0x112   : > { %v1008_v12 = vsel %vm1005_vm12, %v995_v51, %v883_v57 }
 0x113   : > { %1845 = vmatmul.msk.f32.gmra.mxu0 %vm1027_vm13, %v1008_v12 }
 0x118   : > { %v779_v49 = vpop.permute.xlu1 %778  ;;  %v741_v0 = vpop.permute.xlu0 %740 }
 0x119   : > { %v885_v31 = vpop.permute.xlu2 %884  ;;  %v961_v45 = vsel %vm953_vm8, %v948_v36, %v741_v0 }
 0x11a   : > { %v974_v58 = vsel %vm966_vm9, %v961_v45, %v779_v49 }
 0x120   : > { %v733_v32 = vpop.permute.xlu1 %732  ;;  %v817_v47 = vpop.permute.xlu0 %816 }
 0x121   : > { %v987_v8 = vsel %vm979_vm10, %v974_v58, %v817_v47  ;;  %v697_v7 = vpop.permute.xlu2 %696  ;;  %v957_v5 = vsel %vm953_vm8, %v944_v24, %v733_v32 }
 0x122   : > { %v1000_v48 = vsel %vm992_vm11, %v987_v8, %v855_v37  ;;  %v945_v53 = vsel %vm940_vm7, %v2477_v23, %v697_v7 }
 0x128   : > { %v893_v54 = vpop.permute.xlu1 %892  ;;  %v771_v9 = vpop.permute.xlu0 %770 }
 0x129   : > { %v1013_v1 = vsel %vm1005_vm12, %v1000_v48, %v893_v54  ;;  %v970_v43 = vsel %vm966_vm9, %v957_v5, %v771_v9  ;;  %v857_v39 = vpop.permute.xlu2 %856 }
 0x12a   : > { %1850 = vmatmul.msk.f32.gmra.mxu2 %vm1027_vm13, %v1013_v1  ;;  %v983_v60 = vsel %vm979_vm10, %v970_v43, %v809_v42 }
 0x130   : > { %v705_v16 = vpop.permute.xlu1 %704  ;;  %v847_v57 = vpop.permute.xlu0 %846 }
 0x131   : > { %v996_v4 = vsel %vm992_vm11, %v983_v60, %v847_v57  ;;  %v811_v29 = vpop.permute.xlu2 %810  ;;  %v949_v62 = vsel %vm940_vm7, %v936_v38, %v705_v16 }
 0x132   : > { %v1009_v2 = vsel %vm1005_vm12, %v996_v4, %v885_v31 }
 0x133   : > { %1846 = vmatmul.msk.f32.gmra.mxu0 %vm1027_vm13, %v1009_v2 }
 0x138   : > { %v781_v46 = vpop.permute.xlu1 %780  ;;  %v743_v55 = vpop.permute.xlu0 %742 }
 0x139   : > { %v962_v56 = vsel %vm953_vm8, %v949_v62, %v743_v55  ;;  %v709_v19 = vpop.permute.xlu2 %708 }
 0x13a   : > { %v975_v25 = vsel %vm966_vm9, %v962_v56, %v781_v46  ;;  %v951_v45 = vsel %vm940_vm7, %v2531_v33, %v709_v19 }
 0x140   : > { %v735_v59 = vpop.permute.xlu1 %734  ;;  %v819_v52 = vpop.permute.xlu0 %818 }
 0x141   : > { %v988_v3 = vsel %vm979_vm10, %v975_v25, %v819_v52  ;;  %v747_v44 = vpop.permute.xlu2 %746  ;;  %v958_v15 = vsel %vm953_vm8, %v945_v53, %v735_v59  ;;  %v926_v59 = vsel %vm914_vm4, %v2454_v63, %v2340_v22 }
 0x142   : > { %v1001_v14 = vsel %vm992_vm11, %v988_v3, %v857_v39  ;;  %v964_v47 = vsel %vm953_vm8, %v951_v45, %v747_v44 }
 0x148   : > { %v895_v27 = vpop.permute.xlu1 %894  ;;  %v773_v17 = vpop.permute.xlu0 %772 }
 0x149   : > { %v1014_v18 = vsel %vm1005_vm12, %v1001_v14, %v895_v27  ;;  %v971_v50 = vsel %vm966_vm9, %v958_v15, %v773_v17  ;;  %v821_v0 = vpop.permute.xlu2 %820 }
 0x14a   : > { %1851 = vmatmul.msk.f32.gmra.mxu2 %vm1027_vm13, %v1014_v18  ;;  %v984_v51 = vsel %vm979_vm10, %v971_v50, %v811_v29 }
 0x150   : > { %v707_v41 = vpop.permute.xlu1 %706  ;;  %v849_v37 = vpop.permute.xlu0 %848 }
 0x151   : > { %v1085_v13 = vpop.f32.mrf.mxu0  ;;  %v997_v23 = vsel %vm992_vm11, %v984_v51, %v849_v37  ;;  %v861_v20 = vpop.permute.xlu2 %860  ;;  %v950_v58 = vsel %vm940_vm7, %v2536_v61, %v707_v41 }
 0x152   : > { %v1086_v34 = vadd.f32 %v2729_v40, %v1085_v13 }
 0x154   : > { %v1121_v10 = vmax.f32 %v1086_v34, 0.0 }
 0x156   : > { %v2742_v30 = vsel %vm2734_vm14, %v1121_v10, 0.0 }
 0x157   : > { %1327 = vrot.lane.b32.xlu0 %v2742_v30, %s2008_s15  ;;  %v1247_v11 = vrot.slane %v2742_v30, 7  ;;  %v1283_v14 = vrot.slane %v2742_v30, 1 }
 0x158   : > { %v745_v12 = vpop.permute.xlu1 %744  ;;  %v887_v42 = vpop.permute.xlu0 %886 }
 0x159   : > { %v1010_v49 = vsel %vm1005_vm12, %v997_v23, %v887_v42  ;;  %v963_v8 = vsel %vm953_vm8, %v950_v58, %v745_v12  ;;  %v663_v24 = vpop.permute.xlu2 %662 }
 0x15a   : > { %1847 = vmatmul.msk.f32.gmra.mxu0 %vm1027_vm13, %v1010_v49  ;;  %v939_v25 = vsel %vm927_vm5, %v926_v59, %v663_v24 }
 0x160   : > { %v785_v6 = vpop.permute.xlu1 %784  ;;  %v783_v31 = vpop.permute.xlu0 %782 }
 0x161   : > { %v977_v7 = vsel %vm966_vm9, %v964_v47, %v785_v6  ;;  %v976_v54 = vsel %vm966_vm9, %v963_v8, %v783_v31  ;;  %v787_v38 = vpop.permute.xlu2 %786 }
 0x162   : > { %v989_v5 = vsel %vm979_vm10, %v976_v54, %v821_v0 }
 0x168   : > { %v859_v36 = vpop.permute.xlu1 %858  ;;  %v823_v32 = vpop.permute.xlu0 %822 }
 0x169   : > { %v990_v48 = vsel %vm979_vm10, %v977_v7, %v823_v32  ;;  %v1002_v61 = vsel %vm992_vm11, %v989_v5, %v859_v36  ;;  %v901_v18 = vpop.permute.xlu2 %900 }
 0x16a   : > { %v1003_v16 = vsel %vm992_vm11, %v990_v48, %v861_v20 }
 0x16d   : > { %v1100_v9 = vpop.f32.mrf.mxu2 }
 0x16e   : > { %v1101_v1 = vadd.f32 %v2729_v40, %v1100_v9 }
 0x170   : > { %v2761_v33 = vmax.f32 %v1101_v1, 0.0  ;;  %v899_v43 = vpop.permute.xlu1 %898  ;;  %v897_v57 = vpop.permute.xlu0 %896 }
 0x171   : > { %v1088_v60 = vpop.f32.mrf.mxu0  ;;  %v1016_v39 = vsel %vm1005_vm12, %v1003_v16, %v899_v43  ;;  %v1015_v2 = vsel %vm1005_vm12, %v1002_v61, %v897_v57 }
 0x172   : > { %v1089_v4 = vadd.f32 %v2729_v40, %v1088_v60  ;;  %1853 = vmatmul.msk.f32.vlgmr.msra.gmra.mxu3 %vm1027_vm13, %v1016_v39  ;;  %1337 = vrot.lane.b32.xlu1 %v2761_v33, %s2008_s15  ;;  %v1288_v35 = vrot.slane %v2761_v33, 1 }
 0x173   : > { %1852 = vmatmul.msk.f32.gmra.mxu2 %vm1027_vm13, %v1015_v2 }
 0x174   : > { %v1122_v46 = vmax.f32 %v1089_v4, 0.0 }
 0x176   : > { %v1236_v55 = vsel %vm2734_vm14, %v1122_v46, 0.0 }
 0x177   : > { %1329 = vrot.lane.b32.xlu2 %v1236_v55, %s2008_s15  ;;  %v1248_v29 = vrot.slane %v1236_v55, 7  ;;  %v1284_v19 = vrot.slane %v1236_v55, 1 }
 0x178   : > { %v749_v62 = vpop.permute.xlu1 %748  ;;  %v711_v56 = vpop.permute.xlu0 %710 }
 0x179   : > { %v2783_v52 = vsel %vm486_vm2, %v1247_v11, %v1248_v29  ;;  %v952_v3 = vsel %vm940_vm7, %v939_v25, %v711_v56  ;;  %v1305_v44 = vsel %vm541_vm0, %v1283_v14, %v1284_v19 }
 0x17a   : > { %1497 = vrot.lane.b32.xlu1 %v2761_v33, %s2015_s16  ;;  %v965_v27 = vsel %vm953_vm8, %v952_v3, %v749_v62  ;;  %v1252_v62 = vrot.slane %v2761_v33, 7 }
 0x17b   : > { %v978_v63 = vsel %vm966_vm9, %v965_v27, %v787_v38 }
 0x180   : > { %v863_v22 = vpop.permute.xlu1 %862  ;;  %v825_v17 = vpop.permute.xlu0 %824 }
 0x181   : > { %v991_v41 = vsel %vm979_vm10, %v978_v63, %v825_v17 }
 0x182   : > { %1359 = vrot.lane.b32.xlu1 %v1305_v44, %s2009_s7  ;;  %v1004_v26 = vsel %vm992_vm11, %v991_v41, %v863_v22 }
 0x183   : > { %v1017_v37 = vsel %vm1005_vm12, %v1004_v26, %v901_v18 }
 0x184   : > { %1854 = vmatmul.msk.f32.gmra.mxu3 %vm1027_vm13, %v1017_v37 }
 0x18d   : > { %v1103_v13 = vpop.f32.mrf.mxu2 }
 0x18e   : > { %v1104_v34 = vadd.f32 %v2729_v40, %v1103_v13 }
 0x190   : > { %v2802_v53 = vmax.f32 %v1104_v34, 0.0  ;;  %v1091_v10 = vpop.f32.mrf.mxu0 }
 0x191   : > { %v1092_v12 = vadd.f32 %v2729_v40, %v1091_v10 }
 0x192   : > { %v1289_v15 = vrot.slane %v2802_v53, 1  ;;  %v1253_v32 = vrot.slane %v2802_v53, 7 }
 0x193   : > { %v1123_v23 = vmax.f32 %v1092_v12, 0.0 }
 0x194   : > { %v1300_v50 = vsel %vm541_vm0, %v1288_v35, %v1289_v15 }
 0x195   : > { %v2812_v51 = vsel %vm559_vm1, 0.0, %v1300_v50  ;;  %v1285_v42 = vrot.slane %v1123_v23, 1  ;;  %v1249_v8 = vrot.slane %v1123_v23, 7 }
 0x196   : > { %1369 = vrot.lane.b32.xlu0 %v2812_v51, %s2009_s7 }
 0x197   : > { %v1304_v49 = vsel %vm541_vm0, %v1284_v19, %v1285_v42  ;;  %v1268_v54 = vsel %vm486_vm2, %v1248_v29, %v1249_v8  ;;  %v1185_v19 = vstv %s1184_s22 }
 0x198   : > { %v1308_v0 = vsel %vm559_vm1, 0.0, %v1304_v49  ;;  %v2849_v48 = vsel %vm503_vm3, 0.0, %v1268_v54  ;;  %vm2911_vm15 = vcmp.eq.s32.totalorder %v1185_v19, 1  ;;  %v1610_v19 = vld [vmem:[%s3230_s5 + $0x8] sm:$0xff] }
 0x19e   : > { %1417 = vrot.lane.b32.xlu0 %v1123_v23, %s2013_s13 }
 0x1a6   : > { %1361 = vrot.lane.b32.xlu0 %v1308_v0, %s2009_s7 }
 0x1ad   : > { %v1106_v6 = vpop.f32.mrf.mxu2 }
 0x1ae   : > { %v1107_v31 = vadd.f32 %v2729_v40, %v1106_v6 }
 0x1b0   : > { %v2824_v20 = vmax.f32 %v1107_v31, 0.0  ;;  %v1094_v36 = vpop.f32.mrf.mxu0 }
 0x1b1   : > { %v1095_v47 = vadd.f32 %v2729_v40, %v1094_v36 }
 0x1b2   : > { %1427 = vrot.lane.b32.xlu1 %v2824_v20, %s2013_s13  ;;  %v1254_v45 = vrot.slane %v2824_v20, 7  ;;  %v1290_v57 = vrot.slane %v2824_v20, 1 }
 0x1b3   : > { %v2841_v7 = vmax.f32 %v1095_v47, 0.0 }
 0x1b4   : > { %v2837_v58 = vsel %vm486_vm2, %v1253_v32, %v1254_v45  ;;  %v2956_v6 = vsel %vm541_vm0, %v1289_v15, %v1290_v57 }
 0x1b5   : > { %1401 = vrot.lane.b32.xlu2 %v2837_v58, %s2010_s8  ;;  %v1286_v9 = vrot.slane %v2841_v7, 1  ;;  %v1250_v1 = vrot.slane %v2841_v7, 7 }
 0x1b7   : > { %v1303_v24 = vsel %vm541_vm0, %v1285_v42, %v1286_v9  ;;  %v2860_v5 = vsel %vm486_vm2, %v1249_v8, %v1250_v1 }
 0x1ba   : > { %1419 = vrot.lane.b32.xlu1 %v2841_v7, %s2013_s13 }
 0x1bd   : > { %1391 = vrot.lane.b32.xlu2 %v2849_v48, %s2010_s8 }
 0x1c2   : > { %1443 = vrot.lane.b32.xlu1 %v1303_v24, %s2012_s11 }
 0x1c5   : > { %1393 = vrot.lane.b32.xlu2 %v2860_v5, %s2010_s8 }
 0x1cd   : > { %v1109_v43 = vpop.f32.mrf.mxu2 }
 0x1ce   : > { %v1110_v16 = vadd.f32 %v2729_v40, %v1109_v43 }
 0x1d0   : > { %v2865_v61 = vmax.f32 %v1110_v16, 0.0  ;;  %v1328_v16 = vpop.permute.xlu0 %1327 }
 0x1d2   : > { %v1291_v60 = vrot.slane %v2865_v61, 1  ;;  %v1255_v34 = vrot.slane %v2865_v61, 7 }
 0x1d4   : > { %v1298_v39 = vsel %vm541_vm0, %v1290_v57, %v1291_v60  ;;  %v1262_v49 = vsel %vm486_vm2, %v1254_v45, %v1255_v34  ;;  %v1264_v45 = vsel %vm486_vm2, %v1252_v62, %v1253_v32 }
 0x1d5   : > { %v2875_v4 = vsel %vm559_vm1, 0.0, %v1298_v39  ;;  %v2946_v0 = vsel %vm503_vm3, 0.0, %v1262_v49  ;;  %v2971_v15 = vsel %vm503_vm3, 0.0, %v1264_v45 }
 0x1d6   : > { %1453 = vrot.lane.b32.xlu0 %v2875_v4, %s2012_s11 }
 0x1d7   : > { %v1097_v2 = vpop.f32.mrf.mxu0 }
 0x1d8   : > { %v1098_v46 = vadd.f32 %v2729_v40, %v1097_v2 }
 0x1da   : > { %v2880_v55 = vmax.f32 %v1098_v46, 0.0 }
 0x1dc   : > { %v1287_v29 = vrot.slane %v2880_v55, 1  ;;  %v1251_v38 = vrot.slane %v2880_v55, 7 }
 0x1de   : > { %1495 = vrot.lane.b32.xlu0 %v2880_v55, %s2015_s16  ;;  %v2889_v59 = vsel %vm541_vm0, %v1287_v29, %v1288_v35  ;;  %v2893_v56 = vsel %vm486_vm2, %v1251_v38, %v1252_v62  ;;  %v1302_v25 = vsel %vm541_vm0, %v1286_v9, %v1287_v29  ;;  %v1266_v37 = vsel %vm486_vm2, %v1250_v1, %v1251_v38  ;;  %v1612_v62 = vld [vmem:[%s3230_s5 + $0x18] sm:$0xff] }
 0x1df   : > { %1521 = vrot.lane.b32.xlu1 %v2889_v59, %s2014_s14  ;;  %1471 = vrot.lane.b32.xlu2 %v2893_v56, %s2011_s10  ;;  %v1310_v3 = vsel %vm559_vm1, 0.0, %v1302_v25  ;;  %v2927_v12 = vsel %vm503_vm3, 0.0, %v1266_v37 }
 0x1e4   : > { %v3014_v57 = vpop.permute.xlu1 %1337 }
 0x1e6   : > { %1445 = vrot.lane.b32.xlu0 %v1310_v3, %s2012_s11 }
 0x1e7   : > { %1331 = vrot.lane.b32.xlu1 %v1123_v23, %s2008_s15 }
 0x1ec   : > { %v3027_v2 = vpop.permute.xlu1 %1497 }
 0x1ee   : > { %1523 = vrot.lane.b32.xlu0 %v2812_v51, %s2014_s14 }
 0x1f4   : > { %v1360_v38 = vpop.permute.xlu1 %1359 }
 0x1f5   : > { %v1115_v27 = vpop.f32.mrf.mxu3 }
 0x1f6   : > { %v1112_v22 = vpop.f32.mrf.mxu2  ;;  %v1116_v63 = vadd.f32 %v2729_v40, %v1115_v27  ;;  %1363 = vrot.lane.b32.xlu0 %v1303_v24, %s2009_s7  ;;  %v1609_v27 = vld [vmem:[%s3230_s5] sm:$0xff] }
 0x1f7   : > { %v1113_v17 = vadd.f32 %v2729_v40, %v1112_v22 }
 0x1f8   : > { %v1131_v44 = vmax.f32 %v1116_v63, 0.0 }
 0x1f9   : > { %v1130_v41 = vmax.f32 %v1113_v17, 0.0 }
 0x1fa   : > { %v2917_v26 = vsel %vm2911_vm15, %v1131_v44, 0.0 }
 0x1fb   : > { %v1293_v13 = vrot.slane %v2917_v26, 1  ;;  %v1256_v35 = vrot.slane %v1130_v41, 7  ;;  %v1292_v10 = vrot.slane %v1130_v41, 1  ;;  %v1257_v54 = vrot.slane %v2917_v26, 7 }
 0x1fd   : > { %v1261_v50 = vsel %vm486_vm2, %v1255_v34, %v1256_v35  ;;  %v1296_v23 = vsel %vm541_vm0, %v1292_v10, %v1293_v13  ;;  %v1260_v24 = vsel %vm486_vm2, %v1256_v35, %v1257_v54 }
 0x1fe   : > { %1479 = vrot.lane.b32.xlu2 %v1261_v50, %s2011_s10  ;;  %1395 = vrot.lane.b32.xlu0 %v2927_v12, %s2010_s8  ;;  %v2936_v42 = vsel %vm559_vm1, 0.0, %v1296_v23  ;;  %v1281_v43 = vsel %vm503_vm3, 0.0, %v1260_v24 }
 0x1ff   : > { %1531 = vrot.lane.b32.xlu1 %v2936_v42, %s2014_s14 }
 0x206   : > { %1469 = vrot.lane.b32.xlu2 %v2927_v12, %s2011_s10  ;;  %1403 = vrot.lane.b32.xlu0 %v2946_v0, %s2010_s8 }
 0x207   : > { %1371 = vrot.lane.b32.xlu1 %v2956_v6, %s2009_s7  ;;  %v1118_v31 = vpop.f32.mrf.mxu3 }
 0x208   : > { %v1119_v36 = vadd.f32 %v2729_v40, %v1118_v31  ;;  %v3019_v39 = vpop.permute.xlu0 %1369 }
 0x20a   : > { %v1132_v47 = vmax.f32 %v1119_v36, 0.0 }
 0x20c   : > { %v2967_v8 = vsel %vm2911_vm15, %v1132_v47, 0.0 }
 0x20d   : > { %v1258_v9 = vrot.slane %v2967_v8, 7  ;;  %v1294_v40 = vrot.slane %v2967_v8, 1 }
 0x20e   : > { %1505 = vrot.lane.b32.xlu2 %v1130_v41, %s2015_s16  ;;  %1473 = vrot.lane.b32.xlu0 %v2971_v15, %s2011_s10 }
 0x20f   : > { %1447 = vrot.lane.b32.xlu1 %v2889_v59, %s2012_s11  ;;  %v2985_v32 = vsel %vm486_vm2, %v1258_v9, %v1247_v11  ;;  %v1295_v1 = vsel %vm541_vm0, %v1293_v13, %v1294_v40  ;;  %v3000_v11 = vsel %vm541_vm0, %v1291_v60, %v1292_v10  ;;  %v3017_v60 = vpop.permute.xlu2 %1329  ;;  %v1259_v22 = vsel %vm486_vm2, %v1257_v54, %v1258_v9 }
 0x210   : > { %v1418_v29 = vpop.permute.xlu0 %1417  ;;  %v1306_v18 = vsel %vm541_vm0, %v1294_v40, %v1283_v14  ;;  %v1271_v30 = vsel %vm503_vm3, 0.0, %v2985_v32  ;;  %v1546_v10 = vsel %vm914_vm4, %v2783_v52, %v3017_v60  ;;  %v1550_v40 = vsel %vm914_vm4, %v2893_v56, %v3014_v57 }
 0x211   : > { %v1545_v14 = vsel %vm914_vm4, %v1271_v30, %v1328_v16 }
 0x212   : > { %v1553_v13 = vsel %vm927_vm5, %v1545_v14, %v1360_v38 }
 0x216   : > { %1339 = vrot.lane.b32.xlu2 %v2802_v53, %s2008_s15  ;;  %1481 = vrot.lane.b32.xlu0 %v1281_v43, %s2011_s10 }
 0x217   : > { %1455 = vrot.lane.b32.xlu1 %v3000_v11, %s2012_s11  ;;  %v3029_v46 = vpop.permute.xlu2 %1401 }
 0x21e   : > { %1421 = vrot.lane.b32.xlu2 %v2880_v55, %s2013_s13  ;;  %1507 = vrot.lane.b32.xlu0 %v2917_v26, %s2015_s16 }
 0x21f   : > { %1525 = vrot.lane.b32.xlu1 %v2956_v6, %s2014_s14  ;;  %v1392_v25 = vpop.permute.xlu2 %1391 }
 0x220   : > { %v1561_v34 = vsel %vm940_vm7, %v1553_v13, %v1392_v25 }
 0x221   : > { %v1569_v21 = vsel %vm953_vm8, %v1561_v34, %v1418_v29 }
 0x226   : > { %1429 = vrot.lane.b32.xlu2 %v2865_v61, %s2013_s13  ;;  %1341 = vrot.lane.b32.xlu0 %v2824_v20, %s2008_s15 }
 0x227   : > { %1365 = vrot.lane.b32.xlu1 %v1310_v3, %s2009_s7  ;;  %v1362_v3 = vpop.permute.xlu0 %1361  ;;  %v1394_v63 = vpop.permute.xlu2 %1393 }
 0x228   : > { %v1554_v49 = vsel %vm927_vm5, %v1546_v10, %v1362_v3 }
 0x22e   : > { %1499 = vrot.lane.b32.xlu2 %v2802_v53, %s2015_s16  ;;  %1423 = vrot.lane.b32.xlu0 %v2761_v33, %s2013_s13  ;;  %v1613_v33 = vld [vmem:[%s3230_s5 + $0x20] sm:$0xf] }
 0x22f   : > { %1397 = vrot.lane.b32.xlu1 %v2893_v56, %s2010_s8  ;;  %1855 = vmatpush.msk.msra.mxu1 %vm1064_vm6, %v1613_v33 }
 0x230   : > { %1882 = vmatpush.msk.msrb.mxu3 %vm1064_vm6, %v1613_v33 }
 0x231   : > { %1653 = vmatpush.msra.mxu1 %v1612_v62 }
 0x232   : > { %1883 = vmatpush.msrb.mxu3 %v1612_v62 }
 0x236   : > { %1333 = vrot.lane.b32.xlu2 %v2841_v7, %s2008_s15  ;;  %1431 = vrot.lane.b32.xlu0 %v1130_v41, %s2013_s13  ;;  %v1611_v7 = vld [vmem:[%s3230_s5 + $0x10] sm:$0xff]  ;;  %v1318_v41 = vsel %vm559_vm1, 0.0, %v1306_v18 }
 0x237   : > { %1405 = vrot.lane.b32.xlu1 %v1261_v50, %s2010_s8  ;;  %1654 = vmatpush.msra.mxu1 %v1611_v7 }
 0x238   : > { %1884 = vmatpush.msrb.mxu3 %v1611_v7 }
 0x239   : > { %1655 = vmatpush.msra.mxu1 %v1610_v19 }
 0x23a   : > { %1885 = vmatpush.msrb.mxu3 %v1610_v19 }
 0x23b   : > { %1656 = vmatpush.msra.mxu1 %v1609_v27 }
 0x23c   : > { %1886 = vmatpush.msrb.mxu3 %v1609_v27 }
 0x23e   : > { %1533 = vrot.lane.b32.xlu2 %v1295_v1, %s2014_s14  ;;  %1501 = vrot.lane.b32.xlu0 %v2824_v20, %s2015_s16  ;;  %v1428_v20 = vpop.permute.xlu1 %1427  ;;  %v1558_v1 = vsel %vm927_vm5, %v1550_v40, %v3019_v39 }
 0x23f   : > { %1475 = vrot.lane.b32.xlu1 %v2837_v58, %s2011_s10 }
 0x246   : > { %1373 = vrot.lane.b32.xlu2 %v2875_v4, %s2009_s7  ;;  %1335 = vrot.lane.b32.xlu0 %v2880_v55, %s2008_s15  ;;  %v1420_v44 = vpop.permute.xlu1 %1419  ;;  %v1472_v55 = vpop.permute.xlu2 %1471 }
 0x247   : > { %1483 = vrot.lane.b32.xlu1 %v1259_v22, %s2011_s10 }
 0x248   : > { %v1454_v17 = vpop.permute.xlu0 %1453 }
 0x24e   : > { %1449 = vrot.lane.b32.xlu2 %v2812_v51, %s2012_s11  ;;  %1535 = vrot.lane.b32.xlu0 %v1318_v41, %s2014_s14  ;;  %v1444_v28 = vpop.permute.xlu1 %1443 }
 0x24f   : > { %1509 = vrot.lane.b32.xlu1 %v2967_v8, %s2015_s16  ;;  %v1577_v50 = vsel %vm966_vm9, %v1569_v21, %v1444_v28 }
 0x250   : > { %v1496_v26 = vpop.permute.xlu0 %1495 }
 0x256   : > { %1457 = vrot.lane.b32.xlu2 %v2936_v42, %s2012_s11  ;;  %1451 = vrot.lane.b32.xlu0 %v2956_v6, %s2012_s11  ;;  %v1522_v35 = vpop.permute.xlu1 %1521  ;;  %v1562_v6 = vsel %vm940_vm7, %v1554_v49, %v1394_v63 }
 0x257   : > { %1399 = vrot.lane.b32.xlu1 %v2971_v15, %s2010_s8  ;;  %v1570_v36 = vsel %vm953_vm8, %v1562_v6, %v1420_v44  ;;  %s3184_s8 = scalar_lea.vmem %s3231_s6, %s2088_s9 }
 0x258   : > { %v1480_v51 = vpop.permute.xlu2 %1479  ;;  %v1446_v37 = vpop.permute.xlu0 %1445 }
 0x259   : > { %v1578_v45 = vsel %vm966_vm9, %v1570_v36, %v1446_v37 }
 0x25a   : > { %v1586_v52 = vsel %vm979_vm10, %v1578_v45, %v1472_v55 }
 0x25b   : > { %v1594_v9 = vsel %vm992_vm11, %v1586_v52, %v3027_v2 }
 0x25e   : > { %1527 = vrot.lane.b32.xlu2 %v2875_v4, %s2014_s14  ;;  %1529 = vrot.lane.b32.xlu0 %v3000_v11, %s2014_s14  ;;  %v1332_v54 = vpop.permute.xlu1 %1331 }
 0x25f   : > { %1477 = vrot.lane.b32.xlu1 %v2946_v0, %s2011_s10  ;;  %v1547_v7 = vsel %vm914_vm4, %v2849_v48, %v1332_v54 }
 0x260   : > { %v1470_v23 = vpop.permute.xlu2 %1469  ;;  %v1524_v42 = vpop.permute.xlu0 %1523 }
 0x261   : > { %v1585_v4 = vsel %vm979_vm10, %v1577_v50, %v1470_v23  ;;  %v1602_v32 = vsel %vm1005_vm12, %v1594_v9, %v1524_v42 }
 0x262   : > { %v1593_v31 = vsel %vm992_vm11, %v1585_v4, %v1496_v26 }
 0x263   : > { %v1601_v0 = vsel %vm1005_vm12, %v1593_v31, %v1522_v35 }
 0x264   : > { %1856 = vmatmul.msk.f32.vlgmr.msra.gmra.mxu1 %vm1027_vm13, %v1601_v0 }
 0x266   : > { %1367 = vrot.lane.b32.xlu2 %v2889_v59, %s2009_s7  ;;  %v1566_v59 = vsel %vm940_vm7, %v1558_v1, %v3029_v46 }
 0x267   : > { %v1574_v24 = vsel %vm953_vm8, %v1566_v59, %v1428_v20 }
 0x268   : > { %v1506_v47 = vpop.permute.xlu2 %1505  ;;  %v1364_v8 = vpop.permute.xlu0 %1363  ;;  %v1582_v43 = vsel %vm966_vm9, %v1574_v24, %v1454_v17 }
 0x269   : > { %v1590_v11 = vsel %vm979_vm10, %v1582_v43, %v1480_v51  ;;  %v1555_v19 = vsel %vm927_vm5, %v1547_v7, %v1364_v8 }
 0x26a   : > { %v1598_v57 = vsel %vm992_vm11, %v1590_v11, %v1506_v47 }
 0x26c   : > { %1857 = vmatmul.msk.f32.gmra.mxu1 %vm1027_vm13, %v1602_v32 }
 0x26e   : > { %1425 = vrot.lane.b32.xlu2 %v2802_v53, %s2013_s13 }
 0x270   : > { %v1340_v56 = vpop.permute.xlu2 %1339  ;;  %v1396_v16 = vpop.permute.xlu0 %1395 }
 0x271   : > { %v1532_v60 = vpop.permute.xlu1 %1531  ;;  %v1563_v27 = vsel %vm940_vm7, %v1555_v19, %v1396_v16  ;;  %v1551_v22 = vsel %vm914_vm4, %v2971_v15, %v1340_v56 }
 0x272   : > { %v1606_v39 = vsel %vm1005_vm12, %v1598_v57, %v1532_v60 }
 0x273   : > { %1861 = vmatmul.msk.f32.vlgmr.msrb.gmra.mxu3 %vm1027_vm13, %v1606_v39 }
 0x276   : > { %1503 = vrot.lane.b32.xlu2 %v2865_v61, %s2015_s16 }
 0x278   : > { %v1422_v2 = vpop.permute.xlu2 %1421  ;;  %v1404_v46 = vpop.permute.xlu0 %1403 }
 0x279   : > { %v1372_v29 = vpop.permute.xlu1 %1371  ;;  %v1571_v20 = vsel %vm953_vm8, %v1563_v27, %v1422_v2 }
 0x27a   : > { %v1559_v63 = vsel %vm927_vm5, %v1551_v22, %v1372_v29 }
 0x27b   : > { %v1567_v55 = vsel %vm940_vm7, %v1559_v63, %v1404_v46 }
 0x280   : > { %v1430_v53 = vpop.permute.xlu2 %1429  ;;  %v1474_v38 = vpop.permute.xlu0 %1473 }
 0x281   : > { %v1448_v33 = vpop.permute.xlu1 %1447  ;;  %v1575_v30 = vsel %vm953_vm8, %v1567_v55, %v1430_v53 }
 0x282   : > { %v1579_v61 = vsel %vm966_vm9, %v1571_v20, %v1448_v33 }
 0x283   : > { %v1587_v17 = vsel %vm979_vm10, %v1579_v61, %v1474_v38  ;;  %v1960_v61 = vld [vmem:[%s2094_s12] sm:$0xff] }
 0x288   : > { %v1500_v62 = vpop.permute.xlu2 %1499  ;;  %v1482_v25 = vpop.permute.xlu0 %1481 }
 0x289   : > { %v1456_v3 = vpop.permute.xlu1 %1455  ;;  %v1595_v48 = vsel %vm992_vm11, %v1587_v17, %v1500_v62  ;;  %v1961_v17 = vld [vmem:[%s2094_s12 + $0x8] sm:$0xff] }
 0x28a   : > { %v1583_v28 = vsel %vm966_vm9, %v1575_v30, %v1456_v3 }
 0x28b   : > { %v1591_v15 = vsel %vm979_vm10, %v1583_v28, %v1482_v25 }
 0x290   : > { %v1334_v18 = vpop.permute.xlu2 %1333  ;;  %v1508_v44 = vpop.permute.xlu0 %1507 }
 0x291   : > { %v1526_v41 = vpop.permute.xlu1 %1525  ;;  %v1599_v14 = vsel %vm992_vm11, %v1591_v15, %v1508_v44  ;;  %v1548_v49 = vsel %vm914_vm4, %v2860_v5, %v1334_v18  ;;  %v1964_v15 = vld [vmem:[%s2094_s12 + $0x30] sm:$0xff] }
 0x292   : > { %v1603_v26 = vsel %vm1005_vm12, %v1595_v48, %v1526_v41  ;;  %v1962_v48 = vld [vmem:[%s2094_s12 + $0x28] sm:$0xff] }
 0x293   : > { %1858 = vmatmul.msk.f32.gmra.mxu1 %vm1027_vm13, %v1603_v26  ;;  %v1963_v26 = vld [vmem:[%s2094_s12 + $0x10] sm:$0xff] }
 0x298   : > { %v1534_v51 = vpop.permute.xlu2 %1533  ;;  %v1342_v37 = vpop.permute.xlu0 %1341 }
 0x299   : > { %v1366_v13 = vpop.permute.xlu1 %1365  ;;  %v1607_v34 = vsel %vm1005_vm12, %v1599_v14, %v1534_v51  ;;  %v1552_v32 = vsel %vm914_vm4, %v2837_v58, %v1342_v37  ;;  %v1965_v37 = vld [vmem:[%s2094_s12 + $0x18] sm:$0xff] }
 0x29a   : > { %1862 = vmatmul.msk.f32.gmra.mxu3 %vm1027_vm13, %v1607_v34  ;;  %v1556_v4 = vsel %vm927_vm5, %v1548_v49, %v1366_v13 }
 0x2a0   : > { %v1374_v21 = vpop.permute.xlu2 %1373  ;;  %v1424_v35 = vpop.permute.xlu0 %1423 }
 0x2a1   : > { %v1398_v10 = vpop.permute.xlu1 %1397  ;;  %v1560_v1 = vsel %vm927_vm5, %v1552_v32, %v1374_v21  ;;  %v1966_v21 = vld [vmem:[%s2094_s12 + $0x38] sm:$0xff] }
 0x2a2   : > { %v1564_v6 = vsel %vm940_vm7, %v1556_v4, %v1398_v10 }
 0x2a3   : > { %v1572_v45 = vsel %vm953_vm8, %v1564_v6, %v1424_v35 }
 0x2a8   : > { %v1450_v50 = vpop.permute.xlu2 %1449  ;;  %v1432_v23 = vpop.permute.xlu0 %1431 }
 0x2a9   : > { %v1406_v42 = vpop.permute.xlu1 %1405  ;;  %v1580_v52 = vsel %vm966_vm9, %v1572_v45, %v1450_v50  ;;  %v1967_v50 = vld [vmem:[%s2094_s12 + $0x20] sm:$0xff] }
 0x2aa   : > { %v1568_v59 = vsel %vm940_vm7, %v1560_v1, %v1406_v42 }
 0x2ab   : > { %v1576_v24 = vsel %vm953_vm8, %v1568_v59, %v1432_v23 }
 0x2b0   : > { %v1458_v31 = vpop.permute.xlu2 %1457  ;;  %v1502_v36 = vpop.permute.xlu0 %1501 }
 0x2b1   : > { %v1476_v0 = vpop.permute.xlu1 %1475  ;;  %v1584_v43 = vsel %vm966_vm9, %v1576_v24, %v1458_v31 }
 0x2b2   : > { %v1588_v47 = vsel %vm979_vm10, %v1580_v52, %v1476_v0 }
 0x2b3   : > { %v1596_v9 = vsel %vm992_vm11, %v1588_v47, %v1502_v36 }
 0x2b8   : > { %v1528_v8 = vpop.permute.xlu2 %1527  ;;  %v1336_v54 = vpop.permute.xlu0 %1335 }
 0x2b9   : > { %v1484_v40 = vpop.permute.xlu1 %1483  ;;  %v1604_v5 = vsel %vm1005_vm12, %v1596_v9, %v1528_v8  ;;  %v1549_v2 = vsel %vm914_vm4, %v2927_v12, %v1336_v54 }
 0x2ba   : > { %1859 = vmatmul.msk.f32.gmra.mxu1 %vm1027_vm13, %v1604_v5  ;;  %v1592_v16 = vsel %vm979_vm10, %v1584_v43, %v1484_v40 }
 0x2c0   : > { %v1368_v11 = vpop.permute.xlu2 %1367  ;;  %v1536_v56 = vpop.permute.xlu0 %1535 }
 0x2c1   : > { %v1510_v57 = vpop.permute.xlu1 %1509  ;;  %v1557_v53 = vsel %vm927_vm5, %v1549_v2, %v1368_v11 }
 0x2c2   : > { %v1600_v60 = vsel %vm992_vm11, %v1592_v16, %v1510_v57 }
 0x2c3   : > { %v1608_v39 = vsel %vm1005_vm12, %v1600_v60, %v1536_v56 }
 0x2c4   : > { %1863 = vmatmul.msk.f32.gmra.mxu3 %vm1027_vm13, %v1608_v39 }
 0x2c8   : > { %v1426_v58 = vpop.permute.xlu2 %1425  ;;  %v1452_v46 = vpop.permute.xlu0 %1451 }
 0x2c9   : > { %v1400_v29 = vpop.permute.xlu1 %1399 }
 0x2ca   : > { %v1565_v38 = vsel %vm940_vm7, %v1557_v53, %v1400_v29 }
 0x2cb   : > { %v1573_v33 = vsel %vm953_vm8, %v1565_v38, %v1426_v58 }
 0x2cc   : > { %v1581_v25 = vsel %vm966_vm9, %v1573_v33, %v1452_v46 }
 0x2d0   : > { %v1504_v7 = vpop.permute.xlu2 %1503  ;;  %v1530_v19 = vpop.permute.xlu0 %1529 }
 0x2d1   : > { %v1478_v62 = vpop.permute.xlu1 %1477 }
 0x2d2   : > { %v1589_v3 = vsel %vm979_vm10, %v1581_v25, %v1478_v62 }
 0x2d3   : > { %v1597_v12 = vsel %vm992_vm11, %v1589_v3, %v1504_v7 }
 0x2d4   : > { %v1605_v27 = vsel %vm1005_vm12, %v1597_v12, %v1530_v19 }
 0x2d5   : > { %1860 = vmatmul.msk.f32.gmra.mxu1 %vm1027_vm13, %v1605_v27 }
 0x2e1   : > { %v1658_v20 = vpop.f32.mrf.mxu1 }
 0x2e2   : > { %v1659_v22 = vadd.f32 %v1960_v61, %v1658_v20 }
 0x2e4   : > { %1682 = vst.msk [vmem:[%s3184_s8] sm:$0xff] %vm914_vm4, %v1659_v22 }
 0x2e9   : > { %v1661_v63 = vpop.f32.mrf.mxu1 }
 0x2ea   : > { %v1662_v18 = vadd.f32 %v1961_v17, %v1661_v63 }
 0x2ec   : > { %1683 = vst.msk [vmem:[%s3184_s8 + $0x8] sm:$0xff] %vm914_vm4, %v1662_v18 }
 0x2f6   : > { %v1673_v44 = vpop.f32.mrf.mxu3 }
 0x2f7   : > { %v1674_v41 = vadd.f32 %v1962_v48, %v1673_v44 }
 0x2f9   : > { %1687 = vst.msk [vmem:[%s3184_s8 + $0x28] sm:$0xff] %vm914_vm4, %v1674_v41 }
 0x310   : > { %v1664_v55 = vpop.f32.mrf.mxu1 }
 0x311   : > { %v1665_v30 = vadd.f32 %v1963_v26, %v1664_v55 }
 0x313   : > { %1684 = vst.msk [vmem:[%s3184_s8 + $0x10] sm:$0xff] %vm914_vm4, %v1665_v30 }
 0x31d   : > { %v1676_v28 = vpop.f32.mrf.mxu3 }
 0x31e   : > { %v1677_v14 = vadd.f32 %v1964_v15, %v1676_v28 }
 0x320   : > { %1688 = vst.msk [vmem:[%s3184_s8 + $0x30] sm:$0xff] %vm914_vm4, %v1677_v14 }
 0x337   : > { %v1667_v51 = vpop.f32.mrf.mxu1 }
 0x338   : > { %v1668_v13 = vadd.f32 %v1965_v37, %v1667_v51 }
 0x33a   : > { %1685 = vst.msk [vmem:[%s3184_s8 + $0x18] sm:$0xff] %vm914_vm4, %v1668_v13 }
 0x347   : > { %v1679_v34 = vpop.f32.mrf.mxu3 }
 0x348   : > { %v1680_v35 = vadd.f32 %v1966_v21, %v1679_v34 }
 0x34a   : > { %1689 = vst.msk [vmem:[%s3184_s8 + $0x38] sm:$0xff] %vm914_vm4, %v1680_v35 }
 0x352   : > { %v1670_v10 = vpop.f32.mrf.mxu1 }
 0x353   : > { %v1671_v23 = vadd.f32 %v1967_v50, %v1670_v10 }
 0x355   : > { %1686 = vst.msk [vmem:[%s3184_s8 + $0x20] sm:$0xff] %vm914_vm4, %v1671_v23 }
 0x356 PF: > { %s16_s25 = sadd.s32 1, %s2006_s25   ;;  %s3236_s21 = smov %s1998_s23 }
 0x357   : > { %p13_p1 = scmp.ge.s32.totalorder %s16_s25, 10   ;;  %s3237_s22 = smov %s2002_s24 }
 0x358   : > { %s3238_s23 = smov %s3241_s26  ;;  %s3239_s24 = smov %s3245_s27 }
 0x359   :  { %15 = sbr.rel (!%p13_p1) target bundleno = 3 (0x3), region = 80 }

</bundles_post_ra>
